<compile_context>
chip_gen: v5e
topology: v5e:2x2
jax: 0.10.0
libtpu: 0.0.40
codegen_flags: <defaults>
</compile_context>

<pallas_src>
import jax
import jax.numpy as jnp
from jax.experimental import pallas as pl
from jax.experimental.pallas import tpu as pltpu

# ----------------------------- model config ---------------------------------
D = 32          # embed dim
H = 4           # attention heads
DH = D // H     # head dim
F = 64          # feed-forward hidden dim
S = 8           # sequence length (e.g. T*H*W tokens after VidTR pooling)
B = 2           # batch
NUM_LAYERS = 2  # number of encoder layers
EPS = 1e-5      # PyTorch LayerNorm default eps
SCALE = 1.0 / (DH ** 0.5)


# ----------------------------- kernel helpers --------------------------------
def _layernorm(x, g, b):
    mu = jnp.mean(x, axis=-1, keepdims=True)
    xc = x - mu
    var = jnp.mean(xc * xc, axis=-1, keepdims=True)
    return xc * jax.lax.rsqrt(var + EPS) * g + b


# ------------------------- fused full-forward kernel --------------------------
def fused_encoder_kernel(src_ref, pos_ref,
                         w_in_ref, wo_ref, w1_ref, w2_ref,
                         b_in_ref, b1_ref, vecd_ref, norm_ref,
                         out_ref):
    # src_ref / pos_ref / out_ref: (B, S, D) whole-array blocks.
    # Token-wise work happens on a flat (B*S, D) slab (batch folded into rows).
    x = src_ref[...].reshape(B * S, D).astype(jnp.float32)
    pos = pos_ref[...].reshape(B * S, D).astype(jnp.float32)

    for li in range(NUM_LAYERS):         # static unroll; activations stay resident
        w_in = w_in_ref[li]              # (D, 3D)  fused Wq | Wk | Wv
        wo = wo_ref[li]                  # (D, D)
        w1 = w1_ref[li]                  # (D, F)
        w2 = w2_ref[li]                  # (F, D)
        b_in = b_in_ref[li]              # (1, 3D)  fused bq | bk | bv
        b1 = b1_ref[li]                  # (1, F)
        vd = vecd_ref[li]                # (6, D): bo, b2, g1, be1, g2, be2

        # ---------------- self attention (q = k = x + pos, v = x) ------------
        xw = jnp.dot(x, w_in, preferred_element_type=jnp.float32) + b_in    # (BS, 3D)
        pw = jnp.dot(pos, w_in, preferred_element_type=jnp.float32)         # (BS, 3D)
        q = (xw[:, 0 * D:1 * D] + pw[:, 0 * D:1 * D]).reshape(B, S, D)
        k = (xw[:, 1 * D:2 * D] + pw[:, 1 * D:2 * D]).reshape(B, S, D)
        v = xw[:, 2 * D:3 * D].reshape(B, S, D)

        head_outs = []
        for h in range(H):               # static unroll over heads
            qh = q[:, :, h * DH:(h + 1) * DH]
            kh = k[:, :, h * DH:(h + 1) * DH]
            vh = v[:, :, h * DH:(h + 1) * DH]
            s = jnp.einsum('bsd,btd->bst', qh, kh,
                           preferred_element_type=jnp.float32) * SCALE
            s = s - jnp.max(s, axis=-1, keepdims=True)
            e = jnp.exp(s)
            p = e * pl.reciprocal(jnp.sum(e, axis=-1, keepdims=True), approx=True)
            head_outs.append(jnp.einsum('bst,btd->bsd', p, vh,
                                        preferred_element_type=jnp.float32))
        attn = jnp.concatenate(head_outs, axis=-1).reshape(B * S, D)

        attn = jnp.dot(attn, wo, preferred_element_type=jnp.float32) + vd[0:1]

        # TODO(synk): dropout omitted (eval mode / deterministic => identity).
        y = _layernorm(x + attn, vd[2:3], vd[3:4])

        # ---------------- feed forward ---------------------------------------
        hmid = jnp.maximum(
            jnp.dot(y, w1, preferred_element_type=jnp.float32) + b1, 0.0)
        ffn = jnp.dot(hmid, w2, preferred_element_type=jnp.float32) + vd[1:2]
        x = _layernorm(y + ffn, vd[4:5], vd[5:6])

    # ---------------- final LayerNorm (TransformerEncoder.norm) --------------
    nrm = norm_ref[...]                  # (2, D): gamma, beta
    x = _layernorm(x, nrm[0:1], nrm[1:2])

    out_ref[...] = x.reshape(B, S, D).astype(out_ref.dtype)


# ------------------------------ JAX wrappers ---------------------------------
def _full_spec(arr):
    nd = arr.ndim
    return pl.BlockSpec(arr.shape, lambda i, _nd=nd: (0,) * _nd)


def transformer_encoder_fused(src_bsd, pos_bsd, params, norm_gb):
    """src_bsd, pos_bsd: (B, S, D). params: dict of layer-stacked weights."""
    ordered = [params[k] for k in ("w_in", "wo", "w1", "w2", "b_in", "b1", "vecd")]
    ordered.append(norm_gb)
    return pl.pallas_call(
        fused_encoder_kernel,
        out_shape=jax.ShapeDtypeStruct(src_bsd.shape, src_bsd.dtype),
        grid=(1,),
        in_specs=[_full_spec(src_bsd), _full_spec(pos_bsd)]
                 + [_full_spec(p) for p in ordered],
        out_specs=_full_spec(src_bsd),
        compiler_params=pltpu.CompilerParams(dimension_semantics=("arbitrary",)),
    )(src_bsd, pos_bsd, *ordered)


@jax.jit
def _forward_arrays(src_sbd, pos_sbd, params, norm_gb):
    # (S, B, D) <-> (B, S, D) swap kept at the XLA boundary (tiny copies);
    # everything else happens inside the single fused Pallas call.
    out_bsd = transformer_encoder_fused(
        jnp.transpose(src_sbd, (1, 0, 2)),
        jnp.transpose(pos_sbd, (1, 0, 2)),
        params, norm_gb)
    return jnp.transpose(out_bsd, (1, 0, 2))


def transformer_encoder_forward(src_sbd, orig_shape, params, norm_gb, pos_sbd=None):
    """Mirrors TransformerEncoder.forward. src/pos: (S, B, D) seq-first."""
    if pos_sbd is None:
        pos_sbd = jnp.zeros_like(src_sbd)
    return _forward_arrays(src_sbd, pos_sbd, params, norm_gb), orig_shape


# --------------------------- parameter construction --------------------------
def init_params(key):
    """Deterministic synthetic parameters, stacked along a leading layer axis.

    Linear weights are stored transposed to (in, out) so the kernel does x @ W.
    Q/K/V are fused into one (D, 3D) in_proj; small vectors are packed.
    """
    per_layer = []
    for li in range(NUM_LAYERS):
        k = jax.random.fold_in(key, li)
        ks = jax.random.split(k, 8)
        sc = 0.05
        wq = sc * jax.random.normal(ks[0], (D, D), jnp.float32)
        wk = sc * jax.random.normal(ks[1], (D, D), jnp.float32)
        wv = sc * jax.random.normal(ks[2], (D, D), jnp.float32)
        bq = sc * jax.random.normal(ks[3], (1, D), jnp.float32)
        bk = jnp.zeros((1, D), jnp.float32)
        bv = jnp.zeros((1, D), jnp.float32)
        wo = sc * jax.random.normal(ks[4], (D, D), jnp.float32)
        bo = jnp.zeros((1, D), jnp.float32)
        w1 = sc * jax.random.normal(ks[5], (D, F), jnp.float32)
        b1 = jnp.zeros((1, F), jnp.float32)
        w2 = sc * jax.random.normal(ks[6], (F, D), jnp.float32)
        b2 = jnp.zeros((1, D), jnp.float32)
        g1 = jnp.ones((1, D), jnp.float32)
        be1 = jnp.zeros((1, D), jnp.float32)
        g2 = jnp.ones((1, D), jnp.float32)
        be2 = jnp.zeros((1, D), jnp.float32)
        per_layer.append(dict(
            w_in=jnp.concatenate([wq, wk, wv], axis=1),                  # (D, 3D)
            wo=wo, w1=w1, w2=w2,
            b_in=jnp.concatenate([bq, bk, bv], axis=1),                  # (1, 3D)
            b1=b1,
            vecd=jnp.concatenate([bo, b2, g1, be1, g2, be2], axis=0),    # (6, D)
        ))
    params = {k: jnp.stack([lp[k] for lp in per_layer]) for k in per_layer[0]}
    norm_gb = jnp.stack([jnp.ones((D,), jnp.float32),
                         jnp.zeros((D,), jnp.float32)])                   # (2, D)
    return params, norm_gb


# ----------------------------- pure-jnp reference -----------------------------
def reference_forward(src_sbd, pos_sbd, params, norm_gb):
    def ln(z, g, b):
        mu = jnp.mean(z, -1, keepdims=True)
        var = jnp.mean((z - mu) ** 2, -1, keepdims=True)
        return (z - mu) * jax.lax.rsqrt(var + EPS) * g + b

    x = jnp.transpose(src_sbd, (1, 0, 2)).reshape(B * S, D)
    pos = jnp.transpose(pos_sbd, (1, 0, 2)).reshape(B * S, D)
    for li in range(NUM_LAYERS):
        w_in = params["w_in"][li]; wo = params["wo"][li]
        w1 = params["w1"][li]; w2 = params["w2"][li]
        b_in = params["b_in"][li]; b1 = params["b1"][li]
        vd = params["vecd"][li]
        xw = x @ w_in + b_in
        pw = pos @ w_in
        q = (xw[:, :D] + pw[:, :D]).reshape(B, S, H, DH)
        k = (xw[:, D:2 * D] + pw[:, D:2 * D]).reshape(B, S, H, DH)
        v = xw[:, 2 * D:].reshape(B, S, H, DH)
        s = jnp.einsum('bshd,bthd->bhst', q, k) * SCALE
        p = jax.nn.softmax(s, axis=-1)
        attn = jnp.einsum('bhst,bthd->bshd', p, v).reshape(B * S, D)
        attn = attn @ wo + vd[0:1]
        y = ln(x + attn, vd[2:3], vd[3:4])
        f = jnp.maximum(y @ w1 + b1, 0.0) @ w2 + vd[1:2]
        x = ln(y + f, vd[4:5], vd[5:6])
    x = ln(x, norm_gb[0:1], norm_gb[1:2])
    return jnp.transpose(x.reshape(B, S, D), (1, 0, 2))


# ----------------------------------- main ------------------------------------
if __name__ == "__main__":
    key = jax.random.PRNGKey(0)
    k_src, k_pos, k_par = jax.random.split(key, 3)

    # src / pos in PyTorch seq-first layout (S, B, D)
    src = jax.random.normal(k_src, (S, B, D), jnp.float32)
    pos = jax.random.normal(k_pos, (S, B, D), jnp.float32)
    orig_shape = (B, D, 2, 2, 2)  # passed through untouched (VidTR bookkeeping)

    params, norm_gb = init_params(k_par)

    out, _ = transformer_encoder_forward(src, orig_shape, params, norm_gb,
                                         pos_sbd=pos)
    out = jax.block_until_ready(out)

    ref = reference_forward(src, pos, params, norm_gb)

    assert out.shape == (S, B, D)
    assert jnp.all(jnp.isfinite(out))
    assert jnp.allclose(out, ref, atol=5e-2, rtol=5e-2), \
        float(jnp.max(jnp.abs(out - ref)))
    print("KERNEL_OK")
</pallas_src>

<mosaic_0001>
module attributes {stable_mosaic.version = 11 : i64} {
  func.func @fused_encoder_kernel(%arg0: i32, %arg1: memref<2x8x32xf32, #tpu.memory_space<vmem>>, %arg2: memref<2x8x32xf32, #tpu.memory_space<vmem>>, %arg3: memref<2x32x96xf32, #tpu.memory_space<vmem>>, %arg4: memref<2x32x32xf32, #tpu.memory_space<vmem>>, %arg5: memref<2x32x64xf32, #tpu.memory_space<vmem>>, %arg6: memref<2x64x32xf32, #tpu.memory_space<vmem>>, %arg7: memref<2x1x96xf32, #tpu.memory_space<vmem>>, %arg8: memref<2x1x64xf32, #tpu.memory_space<vmem>>, %arg9: memref<2x6x32xf32, #tpu.memory_space<vmem>>, %arg10: memref<2x32xf32, #tpu.memory_space<vmem>>, %arg11: memref<2x8x32xf32, #tpu.memory_space<vmem>>) attributes {dimension_semantics = [#tpu.dimension_semantics<arbitrary>], iteration_bounds = array<i64: 1>, scalar_prefetch = 0 : i64, scratch_operands = 0 : i64, tpu.core_type = #tpu.core_type<tc>, window_params = [{pipeline_mode = #tpu.pipeline_mode<synchronous>, transform_indices = @transform_0, window_bounds = array<i64: 2, 8, 32>}, {pipeline_mode = #tpu.pipeline_mode<synchronous>, transform_indices = @transform_1, window_bounds = array<i64: 2, 8, 32>}, {pipeline_mode = #tpu.pipeline_mode<synchronous>, transform_indices = @transform_2, window_bounds = array<i64: 2, 32, 96>}, {pipeline_mode = #tpu.pipeline_mode<synchronous>, transform_indices = @transform_3, window_bounds = array<i64: 2, 32, 32>}, {pipeline_mode = #tpu.pipeline_mode<synchronous>, transform_indices = @transform_4, window_bounds = array<i64: 2, 32, 64>}, {pipeline_mode = #tpu.pipeline_mode<synchronous>, transform_indices = @transform_5, window_bounds = array<i64: 2, 64, 32>}, {pipeline_mode = #tpu.pipeline_mode<synchronous>, transform_indices = @transform_6, window_bounds = array<i64: 2, 1, 96>}, {pipeline_mode = #tpu.pipeline_mode<synchronous>, transform_indices = @transform_7, window_bounds = array<i64: 2, 1, 64>}, {pipeline_mode = #tpu.pipeline_mode<synchronous>, transform_indices = @transform_8, window_bounds = array<i64: 2, 6, 32>}, {pipeline_mode = #tpu.pipeline_mode<synchronous>, transform_indices = @transform_9, window_bounds = array<i64: 2, 32>}, {pipeline_mode = #tpu.pipeline_mode<synchronous>, transform_indices = @transform_10, window_bounds = array<i64: 2, 8, 32>}]} {
    %c0 = arith.constant 0 : index
    %c0_0 = arith.constant 0 : index
    %c0_1 = arith.constant 0 : index
    %0 = vector.load %arg1[%c0, %c0_0, %c0_1] : memref<2x8x32xf32, #tpu.memory_space<vmem>>, vector<2x8x32xf32>
    %1 = vector.shape_cast %0 : vector<2x8x32xf32> to vector<16x32xf32>
    %c0_2 = arith.constant 0 : index
    %c0_3 = arith.constant 0 : index
    %c0_4 = arith.constant 0 : index
    %2 = vector.load %arg2[%c0_2, %c0_3, %c0_4] : memref<2x8x32xf32, #tpu.memory_space<vmem>>, vector<2x8x32xf32>
    %3 = vector.shape_cast %2 : vector<2x8x32xf32> to vector<16x32xf32>
    %c0_5 = arith.constant 0 : index
    %c0_6 = arith.constant 0 : index
    %c0_7 = arith.constant 0 : index
    %4 = vector.load %arg3[%c0_5, %c0_6, %c0_7] : memref<2x32x96xf32, #tpu.memory_space<vmem>>, vector<1x32x96xf32>
    %5 = vector.shape_cast %4 : vector<1x32x96xf32> to vector<32x96xf32>
    %c0_8 = arith.constant 0 : index
    %c0_9 = arith.constant 0 : index
    %c0_10 = arith.constant 0 : index
    %6 = vector.load %arg4[%c0_8, %c0_9, %c0_10] : memref<2x32x32xf32, #tpu.memory_space<vmem>>, vector<1x32x32xf32>
    %7 = vector.shape_cast %6 : vector<1x32x32xf32> to vector<32x32xf32>
    %c0_11 = arith.constant 0 : index
    %c0_12 = arith.constant 0 : index
    %c0_13 = arith.constant 0 : index
    %8 = vector.load %arg5[%c0_11, %c0_12, %c0_13] : memref<2x32x64xf32, #tpu.memory_space<vmem>>, vector<1x32x64xf32>
    %9 = vector.shape_cast %8 : vector<1x32x64xf32> to vector<32x64xf32>
    %c0_14 = arith.constant 0 : index
    %c0_15 = arith.constant 0 : index
    %c0_16 = arith.constant 0 : index
    %10 = vector.load %arg6[%c0_14, %c0_15, %c0_16] : memref<2x64x32xf32, #tpu.memory_space<vmem>>, vector<1x64x32xf32>
    %11 = vector.shape_cast %10 : vector<1x64x32xf32> to vector<64x32xf32>
    %c0_17 = arith.constant 0 : index
    %c0_18 = arith.constant 0 : index
    %c0_19 = arith.constant 0 : index
    %12 = vector.load %arg7[%c0_17, %c0_18, %c0_19] : memref<2x1x96xf32, #tpu.memory_space<vmem>>, vector<1x1x96xf32>
    %13 = vector.shape_cast %12 : vector<1x1x96xf32> to vector<1x96xf32>
    %c0_20 = arith.constant 0 : index
    %c0_21 = arith.constant 0 : index
    %c0_22 = arith.constant 0 : index
    %14 = vector.load %arg8[%c0_20, %c0_21, %c0_22] : memref<2x1x64xf32, #tpu.memory_space<vmem>>, vector<1x1x64xf32>
    %15 = vector.shape_cast %14 : vector<1x1x64xf32> to vector<1x64xf32>
    %c0_23 = arith.constant 0 : index
    %c0_24 = arith.constant 0 : index
    %c0_25 = arith.constant 0 : index
    %16 = vector.load %arg9[%c0_23, %c0_24, %c0_25] : memref<2x6x32xf32, #tpu.memory_space<vmem>>, vector<1x6x32xf32>
    %17 = vector.shape_cast %16 : vector<1x6x32xf32> to vector<6x32xf32>
    %cst = arith.constant dense<0.000000e+00> : vector<16x96xf32>
    %18 = tpu.matmul %1, %5, %cst {dimension_numbers = #tpu.dot_dimension_numbers<[1], [0], [0], [1], [0, 0, 1, 1], [], []>} : vector<16x32xf32>, vector<32x96xf32>, vector<16x96xf32> -> vector<16x96xf32>
    %19 = vector.broadcast %13 : vector<1x96xf32> to vector<16x96xf32>
    %20 = arith.addf %18, %19 : vector<16x96xf32>
    %cst_26 = arith.constant dense<0.000000e+00> : vector<16x96xf32>
    %21 = tpu.matmul %3, %5, %cst_26 {dimension_numbers = #tpu.dot_dimension_numbers<[1], [0], [0], [1], [0, 0, 1, 1], [], []>} : vector<16x32xf32>, vector<32x96xf32>, vector<16x96xf32> -> vector<16x96xf32>
    %22 = vector.extract_strided_slice %20 {offsets = [0, 0], sizes = [16, 32], strides = [1, 1]} : vector<16x96xf32> to vector<16x32xf32>
    %23 = vector.extract_strided_slice %21 {offsets = [0, 0], sizes = [16, 32], strides = [1, 1]} : vector<16x96xf32> to vector<16x32xf32>
    %24 = arith.addf %22, %23 : vector<16x32xf32>
    %25 = vector.shape_cast %24 : vector<16x32xf32> to vector<2x8x32xf32>
    %26 = vector.extract_strided_slice %20 {offsets = [0, 32], sizes = [16, 32], strides = [1, 1]} : vector<16x96xf32> to vector<16x32xf32>
    %27 = vector.extract_strided_slice %21 {offsets = [0, 32], sizes = [16, 32], strides = [1, 1]} : vector<16x96xf32> to vector<16x32xf32>
    %28 = arith.addf %26, %27 : vector<16x32xf32>
    %29 = vector.shape_cast %28 : vector<16x32xf32> to vector<2x8x32xf32>
    %30 = vector.extract_strided_slice %20 {offsets = [0, 64], sizes = [16, 32], strides = [1, 1]} : vector<16x96xf32> to vector<16x32xf32>
    %31 = vector.shape_cast %30 : vector<16x32xf32> to vector<2x8x32xf32>
    %32 = vector.extract_strided_slice %25 {offsets = [0, 0, 0], sizes = [2, 8, 8], strides = [1, 1, 1]} : vector<2x8x32xf32> to vector<2x8x8xf32>
    %33 = vector.extract_strided_slice %29 {offsets = [0, 0, 0], sizes = [2, 8, 8], strides = [1, 1, 1]} : vector<2x8x32xf32> to vector<2x8x8xf32>
    %34 = vector.extract_strided_slice %31 {offsets = [0, 0, 0], sizes = [2, 8, 8], strides = [1, 1, 1]} : vector<2x8x32xf32> to vector<2x8x8xf32>
    "tpu.trace_start"() <{level = 10 : i32, message = "bsd,btd->bst"}> : () -> ()
    %cst_27 = arith.constant dense<0.000000e+00> : vector<2x8x8xf32>
    %35 = tpu.matmul %32, %33, %cst_27 {dimension_numbers = #tpu.dot_dimension_numbers<[2], [2], [1], [1], [0, 0, 0, 1, 1, 1], [0], [0]>} : vector<2x8x8xf32>, vector<2x8x8xf32>, vector<2x8x8xf32> -> vector<2x8x8xf32>
    "tpu.trace_stop"() : () -> ()
    %cst_28 = arith.constant 0.353553385 : f32
    %36 = vector.broadcast %cst_28 : f32 to vector<2x8x8xf32>
    %37 = arith.mulf %35, %36 : vector<2x8x8xf32>
    %cst_29 = arith.constant dense<0xFF800000> : vector<2x8xf32>
    %38 = vector.multi_reduction <maximumf>, %37, %cst_29 [2] : vector<2x8x8xf32> to vector<2x8xf32>
    %39 = vector.shape_cast %38 : vector<2x8xf32> to vector<2x8x1xf32>
    %40 = vector.broadcast %39 : vector<2x8x1xf32> to vector<2x8x8xf32>
    %41 = arith.subf %37, %40 : vector<2x8x8xf32>
    %42 = math.exp %41 : vector<2x8x8xf32>
    %cst_30 = arith.constant dense<0.000000e+00> : vector<2x8xf32>
    %43 = vector.multi_reduction <add>, %42, %cst_30 [2] : vector<2x8x8xf32> to vector<2x8xf32>
    %44 = vector.shape_cast %43 : vector<2x8xf32> to vector<2x8x1xf32>
    %45 = tpu.reciprocal %44 {approx = true} : vector<2x8x1xf32> -> vector<2x8x1xf32>
    %46 = vector.broadcast %45 : vector<2x8x1xf32> to vector<2x8x8xf32>
    %47 = arith.mulf %42, %46 : vector<2x8x8xf32>
    "tpu.trace_start"() <{level = 10 : i32, message = "bst,btd->bsd"}> : () -> ()
    %cst_31 = arith.constant dense<0.000000e+00> : vector<2x8x8xf32>
    %48 = tpu.matmul %47, %34, %cst_31 {dimension_numbers = #tpu.dot_dimension_numbers<[2], [1], [1], [2], [0, 0, 0, 1, 1, 2], [0], [0]>} : vector<2x8x8xf32>, vector<2x8x8xf32>, vector<2x8x8xf32> -> vector<2x8x8xf32>
    "tpu.trace_stop"() : () -> ()
    %49 = vector.extract_strided_slice %25 {offsets = [0, 0, 8], sizes = [2, 8, 8], strides = [1, 1, 1]} : vector<2x8x32xf32> to vector<2x8x8xf32>
    %50 = vector.extract_strided_slice %29 {offsets = [0, 0, 8], sizes = [2, 8, 8], strides = [1, 1, 1]} : vector<2x8x32xf32> to vector<2x8x8xf32>
    %51 = vector.extract_strided_slice %31 {offsets = [0, 0, 8], sizes = [2, 8, 8], strides = [1, 1, 1]} : vector<2x8x32xf32> to vector<2x8x8xf32>
    "tpu.trace_start"() <{level = 10 : i32, message = "bsd,btd->bst"}> : () -> ()
    %cst_32 = arith.constant dense<0.000000e+00> : vector<2x8x8xf32>
    %52 = tpu.matmul %49, %50, %cst_32 {dimension_numbers = #tpu.dot_dimension_numbers<[2], [2], [1], [1], [0, 0, 0, 1, 1, 1], [0], [0]>} : vector<2x8x8xf32>, vector<2x8x8xf32>, vector<2x8x8xf32> -> vector<2x8x8xf32>
    "tpu.trace_stop"() : () -> ()
    %cst_33 = arith.constant 0.353553385 : f32
    %53 = vector.broadcast %cst_33 : f32 to vector<2x8x8xf32>
    %54 = arith.mulf %52, %53 : vector<2x8x8xf32>
    %cst_34 = arith.constant dense<0xFF800000> : vector<2x8xf32>
    %55 = vector.multi_reduction <maximumf>, %54, %cst_34 [2] : vector<2x8x8xf32> to vector<2x8xf32>
    %56 = vector.shape_cast %55 : vector<2x8xf32> to vector<2x8x1xf32>
    %57 = vector.broadcast %56 : vector<2x8x1xf32> to vector<2x8x8xf32>
    %58 = arith.subf %54, %57 : vector<2x8x8xf32>
    %59 = math.exp %58 : vector<2x8x8xf32>
    %cst_35 = arith.constant dense<0.000000e+00> : vector<2x8xf32>
    %60 = vector.multi_reduction <add>, %59, %cst_35 [2] : vector<2x8x8xf32> to vector<2x8xf32>
    %61 = vector.shape_cast %60 : vector<2x8xf32> to vector<2x8x1xf32>
    %62 = tpu.reciprocal %61 {approx = true} : vector<2x8x1xf32> -> vector<2x8x1xf32>
    %63 = vector.broadcast %62 : vector<2x8x1xf32> to vector<2x8x8xf32>
    %64 = arith.mulf %59, %63 : vector<2x8x8xf32>
    "tpu.trace_start"() <{level = 10 : i32, message = "bst,btd->bsd"}> : () -> ()
    %cst_36 = arith.constant dense<0.000000e+00> : vector<2x8x8xf32>
    %65 = tpu.matmul %64, %51, %cst_36 {dimension_numbers = #tpu.dot_dimension_numbers<[2], [1], [1], [2], [0, 0, 0, 1, 1, 2], [0], [0]>} : vector<2x8x8xf32>, vector<2x8x8xf32>, vector<2x8x8xf32> -> vector<2x8x8xf32>
    "tpu.trace_stop"() : () -> ()
    %66 = vector.extract_strided_slice %25 {offsets = [0, 0, 16], sizes = [2, 8, 8], strides = [1, 1, 1]} : vector<2x8x32xf32> to vector<2x8x8xf32>
    %67 = vector.extract_strided_slice %29 {offsets = [0, 0, 16], sizes = [2, 8, 8], strides = [1, 1, 1]} : vector<2x8x32xf32> to vector<2x8x8xf32>
    %68 = vector.extract_strided_slice %31 {offsets = [0, 0, 16], sizes = [2, 8, 8], strides = [1, 1, 1]} : vector<2x8x32xf32> to vector<2x8x8xf32>
    "tpu.trace_start"() <{level = 10 : i32, message = "bsd,btd->bst"}> : () -> ()
    %cst_37 = arith.constant dense<0.000000e+00> : vector<2x8x8xf32>
    %69 = tpu.matmul %66, %67, %cst_37 {dimension_numbers = #tpu.dot_dimension_numbers<[2], [2], [1], [1], [0, 0, 0, 1, 1, 1], [0], [0]>} : vector<2x8x8xf32>, vector<2x8x8xf32>, vector<2x8x8xf32> -> vector<2x8x8xf32>
    "tpu.trace_stop"() : () -> ()
    %cst_38 = arith.constant 0.353553385 : f32
    %70 = vector.broadcast %cst_38 : f32 to vector<2x8x8xf32>
    %71 = arith.mulf %69, %70 : vector<2x8x8xf32>
    %cst_39 = arith.constant dense<0xFF800000> : vector<2x8xf32>
    %72 = vector.multi_reduction <maximumf>, %71, %cst_39 [2] : vector<2x8x8xf32> to vector<2x8xf32>
    %73 = vector.shape_cast %72 : vector<2x8xf32> to vector<2x8x1xf32>
    %74 = vector.broadcast %73 : vector<2x8x1xf32> to vector<2x8x8xf32>
    %75 = arith.subf %71, %74 : vector<2x8x8xf32>
    %76 = math.exp %75 : vector<2x8x8xf32>
    %cst_40 = arith.constant dense<0.000000e+00> : vector<2x8xf32>
    %77 = vector.multi_reduction <add>, %76, %cst_40 [2] : vector<2x8x8xf32> to vector<2x8xf32>
    %78 = vector.shape_cast %77 : vector<2x8xf32> to vector<2x8x1xf32>
    %79 = tpu.reciprocal %78 {approx = true} : vector<2x8x1xf32> -> vector<2x8x1xf32>
    %80 = vector.broadcast %79 : vector<2x8x1xf32> to vector<2x8x8xf32>
    %81 = arith.mulf %76, %80 : vector<2x8x8xf32>
    "tpu.trace_start"() <{level = 10 : i32, message = "bst,btd->bsd"}> : () -> ()
    %cst_41 = arith.constant dense<0.000000e+00> : vector<2x8x8xf32>
    %82 = tpu.matmul %81, %68, %cst_41 {dimension_numbers = #tpu.dot_dimension_numbers<[2], [1], [1], [2], [0, 0, 0, 1, 1, 2], [0], [0]>} : vector<2x8x8xf32>, vector<2x8x8xf32>, vector<2x8x8xf32> -> vector<2x8x8xf32>
    "tpu.trace_stop"() : () -> ()
    %83 = vector.extract_strided_slice %25 {offsets = [0, 0, 24], sizes = [2, 8, 8], strides = [1, 1, 1]} : vector<2x8x32xf32> to vector<2x8x8xf32>
    %84 = vector.extract_strided_slice %29 {offsets = [0, 0, 24], sizes = [2, 8, 8], strides = [1, 1, 1]} : vector<2x8x32xf32> to vector<2x8x8xf32>
    %85 = vector.extract_strided_slice %31 {offsets = [0, 0, 24], sizes = [2, 8, 8], strides = [1, 1, 1]} : vector<2x8x32xf32> to vector<2x8x8xf32>
    "tpu.trace_start"() <{level = 10 : i32, message = "bsd,btd->bst"}> : () -> ()
    %cst_42 = arith.constant dense<0.000000e+00> : vector<2x8x8xf32>
    %86 = tpu.matmul %83, %84, %cst_42 {dimension_numbers = #tpu.dot_dimension_numbers<[2], [2], [1], [1], [0, 0, 0, 1, 1, 1], [0], [0]>} : vector<2x8x8xf32>, vector<2x8x8xf32>, vector<2x8x8xf32> -> vector<2x8x8xf32>
    "tpu.trace_stop"() : () -> ()
    %cst_43 = arith.constant 0.353553385 : f32
    %87 = vector.broadcast %cst_43 : f32 to vector<2x8x8xf32>
    %88 = arith.mulf %86, %87 : vector<2x8x8xf32>
    %cst_44 = arith.constant dense<0xFF800000> : vector<2x8xf32>
    %89 = vector.multi_reduction <maximumf>, %88, %cst_44 [2] : vector<2x8x8xf32> to vector<2x8xf32>
    %90 = vector.shape_cast %89 : vector<2x8xf32> to vector<2x8x1xf32>
    %91 = vector.broadcast %90 : vector<2x8x1xf32> to vector<2x8x8xf32>
    %92 = arith.subf %88, %91 : vector<2x8x8xf32>
    %93 = math.exp %92 : vector<2x8x8xf32>
    %cst_45 = arith.constant dense<0.000000e+00> : vector<2x8xf32>
    %94 = vector.multi_reduction <add>, %93, %cst_45 [2] : vector<2x8x8xf32> to vector<2x8xf32>
    %95 = vector.shape_cast %94 : vector<2x8xf32> to vector<2x8x1xf32>
    %96 = tpu.reciprocal %95 {approx = true} : vector<2x8x1xf32> -> vector<2x8x1xf32>
    %97 = vector.broadcast %96 : vector<2x8x1xf32> to vector<2x8x8xf32>
    %98 = arith.mulf %93, %97 : vector<2x8x8xf32>
    "tpu.trace_start"() <{level = 10 : i32, message = "bst,btd->bsd"}> : () -> ()
    %cst_46 = arith.constant dense<0.000000e+00> : vector<2x8x8xf32>
    %99 = tpu.matmul %98, %85, %cst_46 {dimension_numbers = #tpu.dot_dimension_numbers<[2], [1], [1], [2], [0, 0, 0, 1, 1, 2], [0], [0]>} : vector<2x8x8xf32>, vector<2x8x8xf32>, vector<2x8x8xf32> -> vector<2x8x8xf32>
    "tpu.trace_stop"() : () -> ()
    %100 = tpu.concatenate %48, %65, %82, %99 in 2 : vector<2x8x8xf32>, vector<2x8x8xf32>, vector<2x8x8xf32>, vector<2x8x8xf32> -> vector<2x8x32xf32>
    %101 = vector.shape_cast %100 : vector<2x8x32xf32> to vector<16x32xf32>
    %cst_47 = arith.constant dense<0.000000e+00> : vector<16x32xf32>
    %102 = tpu.matmul %101, %7, %cst_47 {dimension_numbers = #tpu.dot_dimension_numbers<[1], [0], [0], [1], [0, 0, 1, 1], [], []>} : vector<16x32xf32>, vector<32x32xf32>, vector<16x32xf32> -> vector<16x32xf32>
    %103 = vector.extract_strided_slice %17 {offsets = [0, 0], sizes = [1, 32], strides = [1, 1]} : vector<6x32xf32> to vector<1x32xf32>
    %104 = vector.broadcast %103 : vector<1x32xf32> to vector<16x32xf32>
    %105 = arith.addf %102, %104 : vector<16x32xf32>
    %106 = arith.addf %1, %105 : vector<16x32xf32>
    %107 = vector.extract_strided_slice %17 {offsets = [2, 0], sizes = [1, 32], strides = [1, 1]} : vector<6x32xf32> to vector<1x32xf32>
    %108 = vector.extract_strided_slice %17 {offsets = [3, 0], sizes = [1, 32], strides = [1, 1]} : vector<6x32xf32> to vector<1x32xf32>
    %cst_48 = arith.constant dense<0.000000e+00> : vector<16xf32>
    %109 = vector.multi_reduction <add>, %106, %cst_48 [1] : vector<16x32xf32> to vector<16xf32>
    %110 = vector.shape_cast %109 : vector<16xf32> to vector<16x1xf32>
    %cst_49 = arith.constant 3.200000e+01 : f32
    %111 = vector.broadcast %cst_49 : f32 to vector<16x1xf32>
    %112 = arith.divf %110, %111 : vector<16x1xf32>
    %113 = vector.broadcast %112 : vector<16x1xf32> to vector<16x32xf32>
    %114 = arith.subf %106, %113 : vector<16x32xf32>
    %115 = arith.mulf %114, %114 : vector<16x32xf32>
    %cst_50 = arith.constant dense<0.000000e+00> : vector<16xf32>
    %116 = vector.multi_reduction <add>, %115, %cst_50 [1] : vector<16x32xf32> to vector<16xf32>
    %117 = vector.shape_cast %116 : vector<16xf32> to vector<16x1xf32>
    %cst_51 = arith.constant 3.200000e+01 : f32
    %118 = vector.broadcast %cst_51 : f32 to vector<16x1xf32>
    %119 = arith.divf %117, %118 : vector<16x1xf32>
    %cst_52 = arith.constant 9.99999974E-6 : f32
    %120 = vector.broadcast %cst_52 : f32 to vector<16x1xf32>
    %121 = arith.addf %119, %120 : vector<16x1xf32>
    %122 = math.rsqrt %121 : vector<16x1xf32>
    %123 = vector.broadcast %122 : vector<16x1xf32> to vector<16x32xf32>
    %124 = arith.mulf %114, %123 : vector<16x32xf32>
    %125 = vector.broadcast %107 : vector<1x32xf32> to vector<16x32xf32>
    %126 = arith.mulf %124, %125 : vector<16x32xf32>
    %127 = vector.broadcast %108 : vector<1x32xf32> to vector<16x32xf32>
    %128 = arith.addf %126, %127 : vector<16x32xf32>
    %cst_53 = arith.constant dense<0.000000e+00> : vector<16x64xf32>
    %129 = tpu.matmul %128, %9, %cst_53 {dimension_numbers = #tpu.dot_dimension_numbers<[1], [0], [0], [1], [0, 0, 1, 1], [], []>} : vector<16x32xf32>, vector<32x64xf32>, vector<16x64xf32> -> vector<16x64xf32>
    %130 = vector.broadcast %15 : vector<1x64xf32> to vector<16x64xf32>
    %131 = arith.addf %129, %130 : vector<16x64xf32>
    %cst_54 = arith.constant 0.000000e+00 : f32
    %132 = vector.broadcast %cst_54 : f32 to vector<16x64xf32>
    %133 = arith.maximumf %131, %132 : vector<16x64xf32>
    %cst_55 = arith.constant dense<0.000000e+00> : vector<16x32xf32>
    %134 = tpu.matmul %133, %11, %cst_55 {dimension_numbers = #tpu.dot_dimension_numbers<[1], [0], [0], [1], [0, 0, 1, 1], [], []>} : vector<16x64xf32>, vector<64x32xf32>, vector<16x32xf32> -> vector<16x32xf32>
    %135 = vector.extract_strided_slice %17 {offsets = [1, 0], sizes = [1, 32], strides = [1, 1]} : vector<6x32xf32> to vector<1x32xf32>
    %136 = vector.broadcast %135 : vector<1x32xf32> to vector<16x32xf32>
    %137 = arith.addf %134, %136 : vector<16x32xf32>
    %138 = arith.addf %128, %137 : vector<16x32xf32>
    %139 = vector.extract_strided_slice %17 {offsets = [4, 0], sizes = [1, 32], strides = [1, 1]} : vector<6x32xf32> to vector<1x32xf32>
    %140 = vector.extract_strided_slice %17 {offsets = [5, 0], sizes = [1, 32], strides = [1, 1]} : vector<6x32xf32> to vector<1x32xf32>
    %cst_56 = arith.constant dense<0.000000e+00> : vector<16xf32>
    %141 = vector.multi_reduction <add>, %138, %cst_56 [1] : vector<16x32xf32> to vector<16xf32>
    %142 = vector.shape_cast %141 : vector<16xf32> to vector<16x1xf32>
    %cst_57 = arith.constant 3.200000e+01 : f32
    %143 = vector.broadcast %cst_57 : f32 to vector<16x1xf32>
    %144 = arith.divf %142, %143 : vector<16x1xf32>
    %145 = vector.broadcast %144 : vector<16x1xf32> to vector<16x32xf32>
    %146 = arith.subf %138, %145 : vector<16x32xf32>
    %147 = arith.mulf %146, %146 : vector<16x32xf32>
    %cst_58 = arith.constant dense<0.000000e+00> : vector<16xf32>
    %148 = vector.multi_reduction <add>, %147, %cst_58 [1] : vector<16x32xf32> to vector<16xf32>
    %149 = vector.shape_cast %148 : vector<16xf32> to vector<16x1xf32>
    %cst_59 = arith.constant 3.200000e+01 : f32
    %150 = vector.broadcast %cst_59 : f32 to vector<16x1xf32>
    %151 = arith.divf %149, %150 : vector<16x1xf32>
    %cst_60 = arith.constant 9.99999974E-6 : f32
    %152 = vector.broadcast %cst_60 : f32 to vector<16x1xf32>
    %153 = arith.addf %151, %152 : vector<16x1xf32>
    %154 = math.rsqrt %153 : vector<16x1xf32>
    %155 = vector.broadcast %154 : vector<16x1xf32> to vector<16x32xf32>
    %156 = arith.mulf %146, %155 : vector<16x32xf32>
    %157 = vector.broadcast %139 : vector<1x32xf32> to vector<16x32xf32>
    %158 = arith.mulf %156, %157 : vector<16x32xf32>
    %159 = vector.broadcast %140 : vector<1x32xf32> to vector<16x32xf32>
    %160 = arith.addf %158, %159 : vector<16x32xf32>
    %c1 = arith.constant 1 : index
    %c0_61 = arith.constant 0 : index
    %c0_62 = arith.constant 0 : index
    %161 = vector.load %arg3[%c1, %c0_61, %c0_62] : memref<2x32x96xf32, #tpu.memory_space<vmem>>, vector<1x32x96xf32>
    %162 = vector.shape_cast %161 : vector<1x32x96xf32> to vector<32x96xf32>
    %c1_63 = arith.constant 1 : index
    %c0_64 = arith.constant 0 : index
    %c0_65 = arith.constant 0 : index
    %163 = vector.load %arg4[%c1_63, %c0_64, %c0_65] : memref<2x32x32xf32, #tpu.memory_space<vmem>>, vector<1x32x32xf32>
    %164 = vector.shape_cast %163 : vector<1x32x32xf32> to vector<32x32xf32>
    %c1_66 = arith.constant 1 : index
    %c0_67 = arith.constant 0 : index
    %c0_68 = arith.constant 0 : index
    %165 = vector.load %arg5[%c1_66, %c0_67, %c0_68] : memref<2x32x64xf32, #tpu.memory_space<vmem>>, vector<1x32x64xf32>
    %166 = vector.shape_cast %165 : vector<1x32x64xf32> to vector<32x64xf32>
    %c1_69 = arith.constant 1 : index
    %c0_70 = arith.constant 0 : index
    %c0_71 = arith.constant 0 : index
    %167 = vector.load %arg6[%c1_69, %c0_70, %c0_71] : memref<2x64x32xf32, #tpu.memory_space<vmem>>, vector<1x64x32xf32>
    %168 = vector.shape_cast %167 : vector<1x64x32xf32> to vector<64x32xf32>
    %c1_72 = arith.constant 1 : index
    %c0_73 = arith.constant 0 : index
    %c0_74 = arith.constant 0 : index
    %169 = vector.load %arg7[%c1_72, %c0_73, %c0_74] : memref<2x1x96xf32, #tpu.memory_space<vmem>>, vector<1x1x96xf32>
    %170 = vector.shape_cast %169 : vector<1x1x96xf32> to vector<1x96xf32>
    %c1_75 = arith.constant 1 : index
    %c0_76 = arith.constant 0 : index
    %c0_77 = arith.constant 0 : index
    %171 = vector.load %arg8[%c1_75, %c0_76, %c0_77] : memref<2x1x64xf32, #tpu.memory_space<vmem>>, vector<1x1x64xf32>
    %172 = vector.shape_cast %171 : vector<1x1x64xf32> to vector<1x64xf32>
    %c1_78 = arith.constant 1 : index
    %c0_79 = arith.constant 0 : index
    %c0_80 = arith.constant 0 : index
    %173 = vector.load %arg9[%c1_78, %c0_79, %c0_80] : memref<2x6x32xf32, #tpu.memory_space<vmem>>, vector<1x6x32xf32>
    %174 = vector.shape_cast %173 : vector<1x6x32xf32> to vector<6x32xf32>
    %cst_81 = arith.constant dense<0.000000e+00> : vector<16x96xf32>
    %175 = tpu.matmul %160, %162, %cst_81 {dimension_numbers = #tpu.dot_dimension_numbers<[1], [0], [0], [1], [0, 0, 1, 1], [], []>} : vector<16x32xf32>, vector<32x96xf32>, vector<16x96xf32> -> vector<16x96xf32>
    %176 = vector.broadcast %170 : vector<1x96xf32> to vector<16x96xf32>
    %177 = arith.addf %175, %176 : vector<16x96xf32>
    %cst_82 = arith.constant dense<0.000000e+00> : vector<16x96xf32>
    %178 = tpu.matmul %3, %162, %cst_82 {dimension_numbers = #tpu.dot_dimension_numbers<[1], [0], [0], [1], [0, 0, 1, 1], [], []>} : vector<16x32xf32>, vector<32x96xf32>, vector<16x96xf32> -> vector<16x96xf32>
    %179 = vector.extract_strided_slice %177 {offsets = [0, 0], sizes = [16, 32], strides = [1, 1]} : vector<16x96xf32> to vector<16x32xf32>
    %180 = vector.extract_strided_slice %178 {offsets = [0, 0], sizes = [16, 32], strides = [1, 1]} : vector<16x96xf32> to vector<16x32xf32>
    %181 = arith.addf %179, %180 : vector<16x32xf32>
    %182 = vector.shape_cast %181 : vector<16x32xf32> to vector<2x8x32xf32>
    %183 = vector.extract_strided_slice %177 {offsets = [0, 32], sizes = [16, 32], strides = [1, 1]} : vector<16x96xf32> to vector<16x32xf32>
    %184 = vector.extract_strided_slice %178 {offsets = [0, 32], sizes = [16, 32], strides = [1, 1]} : vector<16x96xf32> to vector<16x32xf32>
    %185 = arith.addf %183, %184 : vector<16x32xf32>
    %186 = vector.shape_cast %185 : vector<16x32xf32> to vector<2x8x32xf32>
    %187 = vector.extract_strided_slice %177 {offsets = [0, 64], sizes = [16, 32], strides = [1, 1]} : vector<16x96xf32> to vector<16x32xf32>
    %188 = vector.shape_cast %187 : vector<16x32xf32> to vector<2x8x32xf32>
    %189 = vector.extract_strided_slice %182 {offsets = [0, 0, 0], sizes = [2, 8, 8], strides = [1, 1, 1]} : vector<2x8x32xf32> to vector<2x8x8xf32>
    %190 = vector.extract_strided_slice %186 {offsets = [0, 0, 0], sizes = [2, 8, 8], strides = [1, 1, 1]} : vector<2x8x32xf32> to vector<2x8x8xf32>
    %191 = vector.extract_strided_slice %188 {offsets = [0, 0, 0], sizes = [2, 8, 8], strides = [1, 1, 1]} : vector<2x8x32xf32> to vector<2x8x8xf32>
    "tpu.trace_start"() <{level = 10 : i32, message = "bsd,btd->bst"}> : () -> ()
    %cst_83 = arith.constant dense<0.000000e+00> : vector<2x8x8xf32>
    %192 = tpu.matmul %189, %190, %cst_83 {dimension_numbers = #tpu.dot_dimension_numbers<[2], [2], [1], [1], [0, 0, 0, 1, 1, 1], [0], [0]>} : vector<2x8x8xf32>, vector<2x8x8xf32>, vector<2x8x8xf32> -> vector<2x8x8xf32>
    "tpu.trace_stop"() : () -> ()
    %cst_84 = arith.constant 0.353553385 : f32
    %193 = vector.broadcast %cst_84 : f32 to vector<2x8x8xf32>
    %194 = arith.mulf %192, %193 : vector<2x8x8xf32>
    %cst_85 = arith.constant dense<0xFF800000> : vector<2x8xf32>
    %195 = vector.multi_reduction <maximumf>, %194, %cst_85 [2] : vector<2x8x8xf32> to vector<2x8xf32>
    %196 = vector.shape_cast %195 : vector<2x8xf32> to vector<2x8x1xf32>
    %197 = vector.broadcast %196 : vector<2x8x1xf32> to vector<2x8x8xf32>
    %198 = arith.subf %194, %197 : vector<2x8x8xf32>
    %199 = math.exp %198 : vector<2x8x8xf32>
    %cst_86 = arith.constant dense<0.000000e+00> : vector<2x8xf32>
    %200 = vector.multi_reduction <add>, %199, %cst_86 [2] : vector<2x8x8xf32> to vector<2x8xf32>
    %201 = vector.shape_cast %200 : vector<2x8xf32> to vector<2x8x1xf32>
    %202 = tpu.reciprocal %201 {approx = true} : vector<2x8x1xf32> -> vector<2x8x1xf32>
    %203 = vector.broadcast %202 : vector<2x8x1xf32> to vector<2x8x8xf32>
    %204 = arith.mulf %199, %203 : vector<2x8x8xf32>
    "tpu.trace_start"() <{level = 10 : i32, message = "bst,btd->bsd"}> : () -> ()
    %cst_87 = arith.constant dense<0.000000e+00> : vector<2x8x8xf32>
    %205 = tpu.matmul %204, %191, %cst_87 {dimension_numbers = #tpu.dot_dimension_numbers<[2], [1], [1], [2], [0, 0, 0, 1, 1, 2], [0], [0]>} : vector<2x8x8xf32>, vector<2x8x8xf32>, vector<2x8x8xf32> -> vector<2x8x8xf32>
    "tpu.trace_stop"() : () -> ()
    %206 = vector.extract_strided_slice %182 {offsets = [0, 0, 8], sizes = [2, 8, 8], strides = [1, 1, 1]} : vector<2x8x32xf32> to vector<2x8x8xf32>
    %207 = vector.extract_strided_slice %186 {offsets = [0, 0, 8], sizes = [2, 8, 8], strides = [1, 1, 1]} : vector<2x8x32xf32> to vector<2x8x8xf32>
    %208 = vector.extract_strided_slice %188 {offsets = [0, 0, 8], sizes = [2, 8, 8], strides = [1, 1, 1]} : vector<2x8x32xf32> to vector<2x8x8xf32>
    "tpu.trace_start"() <{level = 10 : i32, message = "bsd,btd->bst"}> : () -> ()
    %cst_88 = arith.constant dense<0.000000e+00> : vector<2x8x8xf32>
    %209 = tpu.matmul %206, %207, %cst_88 {dimension_numbers = #tpu.dot_dimension_numbers<[2], [2], [1], [1], [0, 0, 0, 1, 1, 1], [0], [0]>} : vector<2x8x8xf32>, vector<2x8x8xf32>, vector<2x8x8xf32> -> vector<2x8x8xf32>
    "tpu.trace_stop"() : () -> ()
    %cst_89 = arith.constant 0.353553385 : f32
    %210 = vector.broadcast %cst_89 : f32 to vector<2x8x8xf32>
    %211 = arith.mulf %209, %210 : vector<2x8x8xf32>
    %cst_90 = arith.constant dense<0xFF800000> : vector<2x8xf32>
    %212 = vector.multi_reduction <maximumf>, %211, %cst_90 [2] : vector<2x8x8xf32> to vector<2x8xf32>
    %213 = vector.shape_cast %212 : vector<2x8xf32> to vector<2x8x1xf32>
    %214 = vector.broadcast %213 : vector<2x8x1xf32> to vector<2x8x8xf32>
    %215 = arith.subf %211, %214 : vector<2x8x8xf32>
    %216 = math.exp %215 : vector<2x8x8xf32>
    %cst_91 = arith.constant dense<0.000000e+00> : vector<2x8xf32>
    %217 = vector.multi_reduction <add>, %216, %cst_91 [2] : vector<2x8x8xf32> to vector<2x8xf32>
    %218 = vector.shape_cast %217 : vector<2x8xf32> to vector<2x8x1xf32>
    %219 = tpu.reciprocal %218 {approx = true} : vector<2x8x1xf32> -> vector<2x8x1xf32>
    %220 = vector.broadcast %219 : vector<2x8x1xf32> to vector<2x8x8xf32>
    %221 = arith.mulf %216, %220 : vector<2x8x8xf32>
    "tpu.trace_start"() <{level = 10 : i32, message = "bst,btd->bsd"}> : () -> ()
    %cst_92 = arith.constant dense<0.000000e+00> : vector<2x8x8xf32>
    %222 = tpu.matmul %221, %208, %cst_92 {dimension_numbers = #tpu.dot_dimension_numbers<[2], [1], [1], [2], [0, 0, 0, 1, 1, 2], [0], [0]>} : vector<2x8x8xf32>, vector<2x8x8xf32>, vector<2x8x8xf32> -> vector<2x8x8xf32>
    "tpu.trace_stop"() : () -> ()
    %223 = vector.extract_strided_slice %182 {offsets = [0, 0, 16], sizes = [2, 8, 8], strides = [1, 1, 1]} : vector<2x8x32xf32> to vector<2x8x8xf32>
    %224 = vector.extract_strided_slice %186 {offsets = [0, 0, 16], sizes = [2, 8, 8], strides = [1, 1, 1]} : vector<2x8x32xf32> to vector<2x8x8xf32>
    %225 = vector.extract_strided_slice %188 {offsets = [0, 0, 16], sizes = [2, 8, 8], strides = [1, 1, 1]} : vector<2x8x32xf32> to vector<2x8x8xf32>
    "tpu.trace_start"() <{level = 10 : i32, message = "bsd,btd->bst"}> : () -> ()
    %cst_93 = arith.constant dense<0.000000e+00> : vector<2x8x8xf32>
    %226 = tpu.matmul %223, %224, %cst_93 {dimension_numbers = #tpu.dot_dimension_numbers<[2], [2], [1], [1], [0, 0, 0, 1, 1, 1], [0], [0]>} : vector<2x8x8xf32>, vector<2x8x8xf32>, vector<2x8x8xf32> -> vector<2x8x8xf32>
    "tpu.trace_stop"() : () -> ()
    %cst_94 = arith.constant 0.353553385 : f32
    %227 = vector.broadcast %cst_94 : f32 to vector<2x8x8xf32>
    %228 = arith.mulf %226, %227 : vector<2x8x8xf32>
    %cst_95 = arith.constant dense<0xFF800000> : vector<2x8xf32>
    %229 = vector.multi_reduction <maximumf>, %228, %cst_95 [2] : vector<2x8x8xf32> to vector<2x8xf32>
    %230 = vector.shape_cast %229 : vector<2x8xf32> to vector<2x8x1xf32>
    %231 = vector.broadcast %230 : vector<2x8x1xf32> to vector<2x8x8xf32>
    %232 = arith.subf %228, %231 : vector<2x8x8xf32>
    %233 = math.exp %232 : vector<2x8x8xf32>
    %cst_96 = arith.constant dense<0.000000e+00> : vector<2x8xf32>
    %234 = vector.multi_reduction <add>, %233, %cst_96 [2] : vector<2x8x8xf32> to vector<2x8xf32>
    %235 = vector.shape_cast %234 : vector<2x8xf32> to vector<2x8x1xf32>
    %236 = tpu.reciprocal %235 {approx = true} : vector<2x8x1xf32> -> vector<2x8x1xf32>
    %237 = vector.broadcast %236 : vector<2x8x1xf32> to vector<2x8x8xf32>
    %238 = arith.mulf %233, %237 : vector<2x8x8xf32>
    "tpu.trace_start"() <{level = 10 : i32, message = "bst,btd->bsd"}> : () -> ()
    %cst_97 = arith.constant dense<0.000000e+00> : vector<2x8x8xf32>
    %239 = tpu.matmul %238, %225, %cst_97 {dimension_numbers = #tpu.dot_dimension_numbers<[2], [1], [1], [2], [0, 0, 0, 1, 1, 2], [0], [0]>} : vector<2x8x8xf32>, vector<2x8x8xf32>, vector<2x8x8xf32> -> vector<2x8x8xf32>
    "tpu.trace_stop"() : () -> ()
    %240 = vector.extract_strided_slice %182 {offsets = [0, 0, 24], sizes = [2, 8, 8], strides = [1, 1, 1]} : vector<2x8x32xf32> to vector<2x8x8xf32>
    %241 = vector.extract_strided_slice %186 {offsets = [0, 0, 24], sizes = [2, 8, 8], strides = [1, 1, 1]} : vector<2x8x32xf32> to vector<2x8x8xf32>
    %242 = vector.extract_strided_slice %188 {offsets = [0, 0, 24], sizes = [2, 8, 8], strides = [1, 1, 1]} : vector<2x8x32xf32> to vector<2x8x8xf32>
    "tpu.trace_start"() <{level = 10 : i32, message = "bsd,btd->bst"}> : () -> ()
    %cst_98 = arith.constant dense<0.000000e+00> : vector<2x8x8xf32>
    %243 = tpu.matmul %240, %241, %cst_98 {dimension_numbers = #tpu.dot_dimension_numbers<[2], [2], [1], [1], [0, 0, 0, 1, 1, 1], [0], [0]>} : vector<2x8x8xf32>, vector<2x8x8xf32>, vector<2x8x8xf32> -> vector<2x8x8xf32>
    "tpu.trace_stop"() : () -> ()
    %cst_99 = arith.constant 0.353553385 : f32
    %244 = vector.broadcast %cst_99 : f32 to vector<2x8x8xf32>
    %245 = arith.mulf %243, %244 : vector<2x8x8xf32>
    %cst_100 = arith.constant dense<0xFF800000> : vector<2x8xf32>
    %246 = vector.multi_reduction <maximumf>, %245, %cst_100 [2] : vector<2x8x8xf32> to vector<2x8xf32>
    %247 = vector.shape_cast %246 : vector<2x8xf32> to vector<2x8x1xf32>
    %248 = vector.broadcast %247 : vector<2x8x1xf32> to vector<2x8x8xf32>
    %249 = arith.subf %245, %248 : vector<2x8x8xf32>
    %250 = math.exp %249 : vector<2x8x8xf32>
    %cst_101 = arith.constant dense<0.000000e+00> : vector<2x8xf32>
    %251 = vector.multi_reduction <add>, %250, %cst_101 [2] : vector<2x8x8xf32> to vector<2x8xf32>
    %252 = vector.shape_cast %251 : vector<2x8xf32> to vector<2x8x1xf32>
    %253 = tpu.reciprocal %252 {approx = true} : vector<2x8x1xf32> -> vector<2x8x1xf32>
    %254 = vector.broadcast %253 : vector<2x8x1xf32> to vector<2x8x8xf32>
    %255 = arith.mulf %250, %254 : vector<2x8x8xf32>
    "tpu.trace_start"() <{level = 10 : i32, message = "bst,btd->bsd"}> : () -> ()
    %cst_102 = arith.constant dense<0.000000e+00> : vector<2x8x8xf32>
    %256 = tpu.matmul %255, %242, %cst_102 {dimension_numbers = #tpu.dot_dimension_numbers<[2], [1], [1], [2], [0, 0, 0, 1, 1, 2], [0], [0]>} : vector<2x8x8xf32>, vector<2x8x8xf32>, vector<2x8x8xf32> -> vector<2x8x8xf32>
    "tpu.trace_stop"() : () -> ()
    %257 = tpu.concatenate %205, %222, %239, %256 in 2 : vector<2x8x8xf32>, vector<2x8x8xf32>, vector<2x8x8xf32>, vector<2x8x8xf32> -> vector<2x8x32xf32>
    %258 = vector.shape_cast %257 : vector<2x8x32xf32> to vector<16x32xf32>
    %cst_103 = arith.constant dense<0.000000e+00> : vector<16x32xf32>
    %259 = tpu.matmul %258, %164, %cst_103 {dimension_numbers = #tpu.dot_dimension_numbers<[1], [0], [0], [1], [0, 0, 1, 1], [], []>} : vector<16x32xf32>, vector<32x32xf32>, vector<16x32xf32> -> vector<16x32xf32>
    %260 = vector.extract_strided_slice %174 {offsets = [0, 0], sizes = [1, 32], strides = [1, 1]} : vector<6x32xf32> to vector<1x32xf32>
    %261 = vector.broadcast %260 : vector<1x32xf32> to vector<16x32xf32>
    %262 = arith.addf %259, %261 : vector<16x32xf32>
    %263 = arith.addf %160, %262 : vector<16x32xf32>
    %264 = vector.extract_strided_slice %174 {offsets = [2, 0], sizes = [1, 32], strides = [1, 1]} : vector<6x32xf32> to vector<1x32xf32>
    %265 = vector.extract_strided_slice %174 {offsets = [3, 0], sizes = [1, 32], strides = [1, 1]} : vector<6x32xf32> to vector<1x32xf32>
    %cst_104 = arith.constant dense<0.000000e+00> : vector<16xf32>
    %266 = vector.multi_reduction <add>, %263, %cst_104 [1] : vector<16x32xf32> to vector<16xf32>
    %267 = vector.shape_cast %266 : vector<16xf32> to vector<16x1xf32>
    %cst_105 = arith.constant 3.200000e+01 : f32
    %268 = vector.broadcast %cst_105 : f32 to vector<16x1xf32>
    %269 = arith.divf %267, %268 : vector<16x1xf32>
    %270 = vector.broadcast %269 : vector<16x1xf32> to vector<16x32xf32>
    %271 = arith.subf %263, %270 : vector<16x32xf32>
    %272 = arith.mulf %271, %271 : vector<16x32xf32>
    %cst_106 = arith.constant dense<0.000000e+00> : vector<16xf32>
    %273 = vector.multi_reduction <add>, %272, %cst_106 [1] : vector<16x32xf32> to vector<16xf32>
    %274 = vector.shape_cast %273 : vector<16xf32> to vector<16x1xf32>
    %cst_107 = arith.constant 3.200000e+01 : f32
    %275 = vector.broadcast %cst_107 : f32 to vector<16x1xf32>
    %276 = arith.divf %274, %275 : vector<16x1xf32>
    %cst_108 = arith.constant 9.99999974E-6 : f32
    %277 = vector.broadcast %cst_108 : f32 to vector<16x1xf32>
    %278 = arith.addf %276, %277 : vector<16x1xf32>
    %279 = math.rsqrt %278 : vector<16x1xf32>
    %280 = vector.broadcast %279 : vector<16x1xf32> to vector<16x32xf32>
    %281 = arith.mulf %271, %280 : vector<16x32xf32>
    %282 = vector.broadcast %264 : vector<1x32xf32> to vector<16x32xf32>
    %283 = arith.mulf %281, %282 : vector<16x32xf32>
    %284 = vector.broadcast %265 : vector<1x32xf32> to vector<16x32xf32>
    %285 = arith.addf %283, %284 : vector<16x32xf32>
    %cst_109 = arith.constant dense<0.000000e+00> : vector<16x64xf32>
    %286 = tpu.matmul %285, %166, %cst_109 {dimension_numbers = #tpu.dot_dimension_numbers<[1], [0], [0], [1], [0, 0, 1, 1], [], []>} : vector<16x32xf32>, vector<32x64xf32>, vector<16x64xf32> -> vector<16x64xf32>
    %287 = vector.broadcast %172 : vector<1x64xf32> to vector<16x64xf32>
    %288 = arith.addf %286, %287 : vector<16x64xf32>
    %cst_110 = arith.constant 0.000000e+00 : f32
    %289 = vector.broadcast %cst_110 : f32 to vector<16x64xf32>
    %290 = arith.maximumf %288, %289 : vector<16x64xf32>
    %cst_111 = arith.constant dense<0.000000e+00> : vector<16x32xf32>
    %291 = tpu.matmul %290, %168, %cst_111 {dimension_numbers = #tpu.dot_dimension_numbers<[1], [0], [0], [1], [0, 0, 1, 1], [], []>} : vector<16x64xf32>, vector<64x32xf32>, vector<16x32xf32> -> vector<16x32xf32>
    %292 = vector.extract_strided_slice %174 {offsets = [1, 0], sizes = [1, 32], strides = [1, 1]} : vector<6x32xf32> to vector<1x32xf32>
    %293 = vector.broadcast %292 : vector<1x32xf32> to vector<16x32xf32>
    %294 = arith.addf %291, %293 : vector<16x32xf32>
    %295 = arith.addf %285, %294 : vector<16x32xf32>
    %296 = vector.extract_strided_slice %174 {offsets = [4, 0], sizes = [1, 32], strides = [1, 1]} : vector<6x32xf32> to vector<1x32xf32>
    %297 = vector.extract_strided_slice %174 {offsets = [5, 0], sizes = [1, 32], strides = [1, 1]} : vector<6x32xf32> to vector<1x32xf32>
    %cst_112 = arith.constant dense<0.000000e+00> : vector<16xf32>
    %298 = vector.multi_reduction <add>, %295, %cst_112 [1] : vector<16x32xf32> to vector<16xf32>
    %299 = vector.shape_cast %298 : vector<16xf32> to vector<16x1xf32>
    %cst_113 = arith.constant 3.200000e+01 : f32
    %300 = vector.broadcast %cst_113 : f32 to vector<16x1xf32>
    %301 = arith.divf %299, %300 : vector<16x1xf32>
    %302 = vector.broadcast %301 : vector<16x1xf32> to vector<16x32xf32>
    %303 = arith.subf %295, %302 : vector<16x32xf32>
    %304 = arith.mulf %303, %303 : vector<16x32xf32>
    %cst_114 = arith.constant dense<0.000000e+00> : vector<16xf32>
    %305 = vector.multi_reduction <add>, %304, %cst_114 [1] : vector<16x32xf32> to vector<16xf32>
    %306 = vector.shape_cast %305 : vector<16xf32> to vector<16x1xf32>
    %cst_115 = arith.constant 3.200000e+01 : f32
    %307 = vector.broadcast %cst_115 : f32 to vector<16x1xf32>
    %308 = arith.divf %306, %307 : vector<16x1xf32>
    %cst_116 = arith.constant 9.99999974E-6 : f32
    %309 = vector.broadcast %cst_116 : f32 to vector<16x1xf32>
    %310 = arith.addf %308, %309 : vector<16x1xf32>
    %311 = math.rsqrt %310 : vector<16x1xf32>
    %312 = vector.broadcast %311 : vector<16x1xf32> to vector<16x32xf32>
    %313 = arith.mulf %303, %312 : vector<16x32xf32>
    %314 = vector.broadcast %296 : vector<1x32xf32> to vector<16x32xf32>
    %315 = arith.mulf %313, %314 : vector<16x32xf32>
    %316 = vector.broadcast %297 : vector<1x32xf32> to vector<16x32xf32>
    %317 = arith.addf %315, %316 : vector<16x32xf32>
    %c0_117 = arith.constant 0 : index
    %c0_118 = arith.constant 0 : index
    %318 = vector.load %arg10[%c0_117, %c0_118] : memref<2x32xf32, #tpu.memory_space<vmem>>, vector<2x32xf32>
    %319 = vector.extract_strided_slice %318 {offsets = [0, 0], sizes = [1, 32], strides = [1, 1]} : vector<2x32xf32> to vector<1x32xf32>
    %320 = vector.extract_strided_slice %318 {offsets = [1, 0], sizes = [1, 32], strides = [1, 1]} : vector<2x32xf32> to vector<1x32xf32>
    %cst_119 = arith.constant dense<0.000000e+00> : vector<16xf32>
    %321 = vector.multi_reduction <add>, %317, %cst_119 [1] : vector<16x32xf32> to vector<16xf32>
    %322 = vector.shape_cast %321 : vector<16xf32> to vector<16x1xf32>
    %cst_120 = arith.constant 3.200000e+01 : f32
    %323 = vector.broadcast %cst_120 : f32 to vector<16x1xf32>
    %324 = arith.divf %322, %323 : vector<16x1xf32>
    %325 = vector.broadcast %324 : vector<16x1xf32> to vector<16x32xf32>
    %326 = arith.subf %317, %325 : vector<16x32xf32>
    %327 = arith.mulf %326, %326 : vector<16x32xf32>
    %cst_121 = arith.constant dense<0.000000e+00> : vector<16xf32>
    %328 = vector.multi_reduction <add>, %327, %cst_121 [1] : vector<16x32xf32> to vector<16xf32>
    %329 = vector.shape_cast %328 : vector<16xf32> to vector<16x1xf32>
    %cst_122 = arith.constant 3.200000e+01 : f32
    %330 = vector.broadcast %cst_122 : f32 to vector<16x1xf32>
    %331 = arith.divf %329, %330 : vector<16x1xf32>
    %cst_123 = arith.constant 9.99999974E-6 : f32
    %332 = vector.broadcast %cst_123 : f32 to vector<16x1xf32>
    %333 = arith.addf %331, %332 : vector<16x1xf32>
    %334 = math.rsqrt %333 : vector<16x1xf32>
    %335 = vector.broadcast %334 : vector<16x1xf32> to vector<16x32xf32>
    %336 = arith.mulf %326, %335 : vector<16x32xf32>
    %337 = vector.broadcast %319 : vector<1x32xf32> to vector<16x32xf32>
    %338 = arith.mulf %336, %337 : vector<16x32xf32>
    %339 = vector.broadcast %320 : vector<1x32xf32> to vector<16x32xf32>
    %340 = arith.addf %338, %339 : vector<16x32xf32>
    %341 = vector.shape_cast %340 : vector<16x32xf32> to vector<2x8x32xf32>
    %c0_124 = arith.constant 0 : index
    %c0_125 = arith.constant 0 : index
    %c0_126 = arith.constant 0 : index
    %342 = vector.load %arg11[%c0_124, %c0_125, %c0_126] : memref<2x8x32xf32, #tpu.memory_space<vmem>>, vector<2x8x32xf32>
    tpu.vector_store %arg11[%c0_124, %c0_125, %c0_126], %341 {strides = array<i32>} : memref<2x8x32xf32, #tpu.memory_space<vmem>>, vector<2x8x32xf32>,
    return
  }
  func.func @transform_0(%arg0: i32) -> (i32, i32, i32) {
    %c0_i32 = arith.constant 0 : i32
    %c0_i32_0 = arith.constant 0 : i32
    %c0_i32_1 = arith.constant 0 : i32
    %c0_i32_2 = arith.constant 0 : i32
    return %c0_i32, %c0_i32_0, %c0_i32_1 : i32, i32, i32
  }
  func.func @transform_1(%arg0: i32) -> (i32, i32, i32) {
    %c0_i32 = arith.constant 0 : i32
    %c0_i32_0 = arith.constant 0 : i32
    %c0_i32_1 = arith.constant 0 : i32
    %c0_i32_2 = arith.constant 0 : i32
    return %c0_i32, %c0_i32_0, %c0_i32_1 : i32, i32, i32
  }
  func.func @transform_2(%arg0: i32) -> (i32, i32, i32) {
    %c0_i32 = arith.constant 0 : i32
    %c0_i32_0 = arith.constant 0 : i32
    %c0_i32_1 = arith.constant 0 : i32
    %c0_i32_2 = arith.constant 0 : i32
    return %c0_i32, %c0_i32_0, %c0_i32_1 : i32, i32, i32
  }
  func.func @transform_3(%arg0: i32) -> (i32, i32, i32) {
    %c0_i32 = arith.constant 0 : i32
    %c0_i32_0 = arith.constant 0 : i32
    %c0_i32_1 = arith.constant 0 : i32
    %c0_i32_2 = arith.constant 0 : i32
    return %c0_i32, %c0_i32_0, %c0_i32_1 : i32, i32, i32
  }
  func.func @transform_4(%arg0: i32) -> (i32, i32, i32) {
    %c0_i32 = arith.constant 0 : i32
    %c0_i32_0 = arith.constant 0 : i32
    %c0_i32_1 = arith.constant 0 : i32
    %c0_i32_2 = arith.constant 0 : i32
    return %c0_i32, %c0_i32_0, %c0_i32_1 : i32, i32, i32
  }
  func.func @transform_5(%arg0: i32) -> (i32, i32, i32) {
    %c0_i32 = arith.constant 0 : i32
    %c0_i32_0 = arith.constant 0 : i32
    %c0_i32_1 = arith.constant 0 : i32
    %c0_i32_2 = arith.constant 0 : i32
    return %c0_i32, %c0_i32_0, %c0_i32_1 : i32, i32, i32
  }
  func.func @transform_6(%arg0: i32) -> (i32, i32, i32) {
    %c0_i32 = arith.constant 0 : i32
    %c0_i32_0 = arith.constant 0 : i32
    %c0_i32_1 = arith.constant 0 : i32
    %c0_i32_2 = arith.constant 0 : i32
    return %c0_i32, %c0_i32_0, %c0_i32_1 : i32, i32, i32
  }
  func.func @transform_7(%arg0: i32) -> (i32, i32, i32) {
    %c0_i32 = arith.constant 0 : i32
    %c0_i32_0 = arith.constant 0 : i32
    %c0_i32_1 = arith.constant 0 : i32
    %c0_i32_2 = arith.constant 0 : i32
    return %c0_i32, %c0_i32_0, %c0_i32_1 : i32, i32, i32
  }
  func.func @transform_8(%arg0: i32) -> (i32, i32, i32) {
    %c0_i32 = arith.constant 0 : i32
    %c0_i32_0 = arith.constant 0 : i32
    %c0_i32_1 = arith.constant 0 : i32
    %c0_i32_2 = arith.constant 0 : i32
    return %c0_i32, %c0_i32_0, %c0_i32_1 : i32, i32, i32
  }
  func.func @transform_9(%arg0: i32) -> (i32, i32) {
    %c0_i32 = arith.constant 0 : i32
    %c0_i32_0 = arith.constant 0 : i32
    %c0_i32_1 = arith.constant 0 : i32
    return %c0_i32, %c0_i32_0 : i32, i32
  }
  func.func @transform_10(%arg0: i32) -> (i32, i32, i32) {
    %c0_i32 = arith.constant 0 : i32
    %c0_i32_0 = arith.constant 0 : i32
    %c0_i32_1 = arith.constant 0 : i32
    %c0_i32_2 = arith.constant 0 : i32
    return %c0_i32, %c0_i32_0, %c0_i32_1 : i32, i32, i32
  }
}

</mosaic_0001>

<bundles_post_ra>
// kernel: _forward_arrays.1
= control target key start
LH: loop header
LB: loop body
LE: loop exit
PB: predicated region body
PF: predicated region fallthrough
CT: control target
= control target key end

     0   :  { %vm65_vm0 = vcmask 261120   ;;  %s2016_s11 = smov 112   ;;  %s2017_s12 = smov 64   ;;  %vm129_vm1 = vcmask 64512   ;;  %vm681_vm2 = vcmask 130048   ;;  %vm684_vm3 = vcmask 195584   ;;  %s2539_s2 = inlined_call_operand.vmem [shape: f32[2,32,96], index: 2, kind: input, shape index: {}]   ;;  %s2540_s6 = inlined_call_operand.vmem [shape: f32[2,1,96], index: 6, kind: input, shape index: {}]   ;;  %s2541_s0 = inlined_call_operand.vmem [shape: f32[2,8,32], index: 0, kind: input, shape index: {}]   ;;  %s2542_s1 = inlined_call_operand.vmem [shape: f32[2,8,32], index: 1, kind: input, shape index: {}]   ;;  %s2543_s3 = inlined_call_operand.vmem [shape: f32[2,32,32], index: 3, kind: input, shape index: {}]   ;;  %s2544_s8 = inlined_call_operand.vmem [shape: f32[2,6,32], index: 8, kind: input, shape index: {}]   ;;  %s2545_s7 = inlined_call_operand.vmem [shape: f32[2,1,64], index: 7, kind: input, shape index: {}]   ;;  %s2546_s4 = inlined_call_operand.vmem [shape: f32[2,32,64], index: 4, kind: input, shape index: {}]   ;;  %s2547_s5 = inlined_call_operand.vmem [shape: f32[2,64,32], index: 5, kind: input, shape index: {}]   ;;  %s2548_s9 = inlined_call_operand.vmem [shape: f32[2,32], index: 9, kind: input, shape index: {}]   ;;  %s2549_s10 = inlined_call_operand.vmem [shape: f32[2,8,32], index: 10, kind: output, shape index: {}]  }
   0x1   :  { %v42_v0 = vld [vmem:[%s2539_s2 + $0x18] sm:$0xff]  ;;  %v41_v1 = vld [vmem:[%s2539_s2 + $0x10] sm:$0xff]  ;;  %v40_v2 = vld [vmem:[%s2539_s2 + $0x8] sm:$0xff]  ;;  %s2018_s13 = smov 88   ;;  %s2019_s14 = smov 80   ;;  %vm811_vm11 = vcmask 523264  }
   0x2   :  { %84 = vmatpush.msra.mxu0 %v42_v0  ;;  %113 = vmatpush.msra.mxu1 %v42_v0  ;;  %v39_v3 = vld [vmem:[%s2539_s2] sm:$0xff]  ;;  %v2113_v6 = vld [vmem:[%s2541_s0 + $0x8] sm:$0xff]  ;;  %s2020_s15 = smov 72   ;;  %s2021_s16 = smov 104  }
   0x3   :  { %v2099_v4 = vld [vmem:[%s2541_s0] sm:$0xff]  ;;  %v2118_v7 = vld [vmem:[%s2542_s1 + $0x8] sm:$0xff]  ;;  %s2014_s0 = smov 120   ;;  %s2022_s17 = smov 56  }
   0x4   :  { %85 = vmatpush.msra.mxu0 %v41_v1  ;;  %114 = vmatpush.msra.mxu1 %v41_v1  ;;  %v2104_v5 = vld [vmem:[%s2542_s1] sm:$0xff]  ;;  %s2015_s1 = smov 96   ;;  %s2023_s18 = smov 40  }
   0x5   :  { %v1924_v8 = vld [vmem:[%s2540_s6] ss:$0 sm:$0xff]  ;;  %s2024_s19 = smov 48   ;;  %s2025_s20 = smov 8  }
   0x6   :  { %86 = vmatpush.msra.mxu0 %v40_v2  ;;  %115 = vmatpush.msra.mxu1 %v40_v2  ;;  %s2026_s21 = smov 16   ;;  %s2027_s22 = smov 24  }
   0x8   :  { %87 = vmatpush.msra.mxu0 %v39_v3  ;;  %116 = vmatpush.msra.mxu1 %v39_v3 }
   0x9   :  { %1793 = vmatmul.msk.f32.vlgmr.msra.gmra.mxu0 %vm65_vm0, %v2099_v4  ;;  %1795 = vmatmul.msk.f32.vlgmr.msra.gmra.mxu1 %vm65_vm0, %v2104_v5 }
  0x11   :  { %1794 = vmatmul.msk.f32.gmra.mxu0 %vm65_vm0, %v2113_v6  ;;  %1796 = vmatmul.msk.f32.gmra.mxu1 %vm65_vm0, %v2118_v7 }
  0x86   :  { %v89_v9 = vpop.f32.mrf.mxu0  ;;  %v118_v10 = vpop.f32.mrf.mxu1 }
  0x87   :  { %v2127_v11 = vadd.f32 %v1924_v8, %v89_v9 }
  0x89   :  { %v124_v12 = vadd.f32 %v118_v10, %v2127_v11 }
  0x8b   :  { %259 = vrot.lane.b32.xlu2 %v124_v12, %s2014_s0  ;;  %127 = vrot.lane.b32.xlu0 %v124_v12, %s2015_s1 }
  0x8e   :  { %v92_v13 = vpop.f32.mrf.mxu0  ;;  %v121_v14 = vpop.f32.mrf.mxu1 }
  0x8f   :  { %v2132_v15 = vadd.f32 %v1924_v8, %v92_v13 }
  0x91   :  { %v125_v16 = vadd.f32 %v121_v14, %v2132_v15  ;;  %v2139_v17 = vpack.i.bf16 %v2132_v15, %v2127_v11 }
  0x93   :  { %391 = vrot.lane.b32.xlu2 %v124_v12, %s2016_s11  ;;  %155 = vrot.lane.b32.xlu0 %v125_v16, %s2015_s1 }
  0x9b   :  { %419 = vrot.lane.b32.xlu2 %v125_v16, %s2016_s11  ;;  %1900 = vrot.lane.b32.xlu0 %v2139_v17, %s2017_s12 }
  0xa3   :  { %289 = vrot.lane.b32.xlu0 %v125_v16, %s2018_s13 }
  0xab   :  { %393 = vrot.lane.b32.xlu0 %v124_v12, %s2019_s14 }
  0xb3   :  { %287 = vrot.lane.b32.xlu0 %v125_v16, %s2014_s0 }
  0xbb   :  { %525 = vrot.lane.b32.xlu0 %v124_v12, %s2020_s15 }
  0xc3   :  { %553 = vrot.lane.b32.xlu0 %v125_v16, %s2020_s15 }
  0xe5   :  { %v260_v41 = vpop.permute.xlu2 %259 }
  0xed   :  { %v392_v42 = vpop.permute.xlu2 %391 }
  0xf5   :  { %v420_v43 = vpop.permute.xlu2 %419 }
  0xfd   :  { %v128_v18 = vpop.permute.xlu0 %127 }
  0xfe   :  { %1797 = vmatpush.xpose.msk.msra.mxu2 %vm129_vm1, %v128_v18 }
 0x101   :  { %1798 = vmatmul.msk.f32.vlgmr.msra.gmra.mxu2 %vm129_vm1, %v124_v12 }
 0x105   :  { %v156_v19 = vpop.permute.xlu0 %155 }
 0x106   :  { %1799 = vmatpush.xpose.msk.msra.mxu3 %vm129_vm1, %v156_v19 }
 0x109   :  { %1800 = vmatmul.msk.f32.vlgmr.msra.gmra.mxu3 %vm129_vm1, %v125_v16 }
 0x10d   :  { %v1901_v20 = vpop.permute.xlu0 %1900 }
 0x10e   :  { %v1902_v21 = vunpack.i.l.bf16 %v1901_v20  ;;  %v1903_v22 = vunpack.i.h.bf16 %v1901_v20 }
 0x110   :  { %227 = vmatpush.msrb.mxu2 %v1902_v21  ;;  %254 = vmatpush.msrb.mxu3 %v1903_v22 }
 0x115   :  { %v290_v23 = vpop.permute.xlu0 %289 }
 0x116   :  { %1805 = vmatpush.xpose.msk.msra.mxu3 %vm129_vm1, %v290_v23 }
 0x11d   :  { %v394_v44 = vpop.permute.xlu0 %393 }
 0x125   :  { %v288_v46 = vpop.permute.xlu0 %287 }
 0x12d   :  { %v526_v51 = vpop.permute.xlu0 %525 }
 0x135   :  { %v554_v54 = vpop.permute.xlu0 %553 }
 0x184   :  { %v151_v24 = vpop.f32.mrf.mxu2 }
 0x185   :  { %v181_v25 = vmul.f32 0.35355338, %v151_v24 }
 0x187   :  { %v183_v26 = vsel %vm129_vm1, %v181_v25, -inf }
 0x188   :  { %184 = vmax.xlane.f32.xlu1 %v183_v26 }
 0x18c   :  { %v178_v27 = vpop.f32.mrf.mxu3 }
 0x18d   :  { %v182_v28 = vmul.f32 0.35355338, %v178_v27 }
 0x18f   :  { %v186_v29 = vsel %vm129_vm1, %v182_v28, -inf }
 0x190   :  { %187 = vmax.xlane.f32.xlu1 %v186_v29 }
 0x1a9   :  { %261 = vrot.lane.b32.xlu1 %v124_v12, %s2018_s13 }
 0x1b1   :  { %421 = vrot.lane.b32.xlu1 %v125_v16, %s2019_s14 }
 0x1b9   :  { %523 = vrot.lane.b32.xlu1 %v124_v12, %s2021_s16 }
 0x1fb   :  { %v185_v30 = vpop.xlane.xlu1 %184 }
 0x1fc   :  { %v189_v31 = vsub.f32 %v181_v25, %v185_v30 }
 0x1fe   :  { %v191_v32 = vmul.f32 1.442695, %v189_v31 }
 0x200   :  { %1928 = vpow2.f32 %v191_v32 }
 0x203   :  { %v188_v33 = vpop.xlane.xlu1 %187 }
 0x204   :  { %v190_v34 = vsub.f32 %v182_v28, %v188_v33 }
 0x206   :  { %v1929_v35 = vpop.eup %1928  ;;  %v193_v36 = vmul.f32 1.442695, %v190_v34 }
 0x207   :  { %v195_v37 = vsel %vm129_vm1, %v1929_v35, 0.0 }
 0x208   :  { %1930 = vpow2.f32 %v193_v36  ;;  %196 = vadd.xlane.f32.xlu2 %v195_v37 }
 0x20e   :  { %v1931_v38 = vpop.eup %1930 }
 0x20f   :  { %v198_v39 = vsel %vm129_vm1, %v1931_v38, 0.0 }
 0x210   :  { %199 = vadd.xlane.f32.xlu2 %v198_v39 }
 0x21b   :  { %v262_v40 = vpop.permute.xlu1 %261 }
 0x21c   :  { %1803 = vmatpush.xpose.msk.msra.mxu2 %vm129_vm1, %v262_v40 }
 0x223   :  { %v422_v53 = vpop.permute.xlu1 %421 }
 0x228   :  { %551 = vrot.lane.b32.xlu2 %v125_v16, %s2021_s16 }
 0x22b   :  { %v524_v55 = vpop.permute.xlu1 %523 }
 0x27b   :  { %v197_v45 = vpop.xlane.xlu2 %196 }
 0x27c   :  { %1932 = vrcp.f32 %v197_v45 }
 0x282   :  { %v1933_v47 = vpop.eup %1932 }
 0x283   :  { %v200_v48 = vpop.xlane.xlu2 %199  ;;  %v203_v49 = vmul.f32 %v1933_v47, %v1929_v35 }
 0x284   :  { %1934 = vrcp.f32 %v200_v48 }
 0x285   :  { %1801 = vmatmul.msk.f32.vlgmr.msrb.gmra.mxu2 %vm129_vm1, %v203_v49 }
 0x286   :  { %1809 = vmatpush.xpose.msk.msrb.mxu2 %vm129_vm1, %v394_v44 }
 0x28a   :  { %v1935_v50 = vpop.eup %1934 }
 0x28b   :  { %v204_v52 = vmul.f32 %v1935_v50, %v1931_v38  ;;  %v552_v56 = vpop.permute.xlu2 %551 }
 0x28d   :  { %1802 = vmatmul.msk.f32.vlgmr.msrb.gmra.mxu3 %vm129_vm1, %v204_v52  ;;  %1804 = vmatmul.msk.f32.vlgmr.msra.gmra.mxu2 %vm129_vm1, %v260_v41 }
 0x28e   :  { %1811 = vmatpush.xpose.msk.msrb.mxu3 %vm129_vm1, %v422_v53  ;;  %1815 = vmatpush.xpose.msk.msra.mxu2 %vm129_vm1, %v526_v51 }
 0x295   :  { %1806 = vmatmul.msk.f32.vlgmr.msra.gmra.mxu3 %vm129_vm1, %v288_v46  ;;  %1810 = vmatmul.msk.f32.vlgmr.msrb.gmra.mxu2 %vm129_vm1, %v392_v42 }
 0x296   :  { %1817 = vmatpush.xpose.msk.msra.mxu3 %vm129_vm1, %v554_v54 }
 0x29d   :  { %1812 = vmatmul.msk.f32.vlgmr.msrb.gmra.mxu3 %vm129_vm1, %v420_v43  ;;  %1816 = vmatmul.msk.f32.vlgmr.msra.gmra.mxu2 %vm129_vm1, %v524_v55 }
 0x2a5   :  { %1818 = vmatmul.msk.f32.vlgmr.msra.gmra.mxu3 %vm129_vm1, %v552_v56 }
 0x308   :  { %v2175_v57 = vpop.f32.mrf.mxu2 }
 0x310   :  { %v2177_v58 = vpop.f32.mrf.mxu3  ;;  %v284_v59 = vpop.f32.mrf.mxu2 }
 0x311   :  { %v315_v60 = vmul.f32 0.35355338, %v284_v59 }
 0x313   :  { %v317_v61 = vsel %vm129_vm1, %v315_v60, -inf }
 0x314   :  { %318 = vmax.xlane.f32.xlu1 %v317_v61 }
 0x318   :  { %v312_v62 = vpop.f32.mrf.mxu3  ;;  %v416_v63 = vpop.f32.mrf.mxu2 }
 0x319   :  { %v316_v0 = vmul.f32 0.35355338, %v312_v62  ;;  %v447_v1 = vmul.f32 0.35355338, %v416_v63 }
 0x31b   :  { %v320_v2 = vsel %vm129_vm1, %v316_v0, -inf  ;;  %v449_v3 = vsel %vm129_vm1, %v447_v1, -inf }
 0x31c   :  { %321 = vmax.xlane.f32.xlu0 %v320_v2  ;;  %450 = vmax.xlane.f32.xlu2 %v449_v3 }
 0x320   :  { %v444_v8 = vpop.f32.mrf.mxu3  ;;  %v548_v9 = vpop.f32.mrf.mxu2 }
 0x321   :  { %v448_v10 = vmul.f32 0.35355338, %v444_v8  ;;  %v579_v12 = vmul.f32 0.35355338, %v548_v9 }
 0x323   :  { %v581_v13 = vsel %vm129_vm1, %v579_v12, -inf  ;;  %v452_v14 = vsel %vm129_vm1, %v448_v10, -inf }
 0x324   :  { %582 = vmax.xlane.f32.xlu2 %v581_v13  ;;  %453 = vmax.xlane.f32.xlu1 %v452_v14 }
 0x328   :  { %v576_v16 = vpop.f32.mrf.mxu3 }
 0x329   :  { %v580_v18 = vmul.f32 0.35355338, %v576_v16 }
 0x32b   :  { %v584_v19 = vsel %vm129_vm1, %v580_v18, -inf }
 0x32c   :  { %585 = vmax.xlane.f32.xlu0 %v584_v19 }
 0x33d   :  { %1905 = vrot.lane.b32.xlu1 %v2139_v17, %s2022_s17 }
 0x387   :  { %v319_v20 = vpop.xlane.xlu1 %318 }
 0x388   :  { %v323_v21 = vsub.f32 %v315_v60, %v319_v20 }
 0x38a   :  { %v325_v22 = vmul.f32 1.442695, %v323_v21 }
 0x38c   :  { %1936 = vpow2.f32 %v325_v22 }
 0x38f   :  { %v322_v23 = vpop.xlane.xlu0 %321  ;;  %v451_v24 = vpop.xlane.xlu2 %450 }
 0x390   :  { %v324_v25 = vsub.f32 %v316_v0, %v322_v23  ;;  %v455_v26 = vsub.f32 %v447_v1, %v451_v24  ;;  %v46_v24 = vld [vmem:[%s2543_s3 + $0x18] sm:$0xff] }
 0x391   :  { %706 = vmatpush.msrb.mxu2 %v46_v24 }
 0x392   :  { %v1937_v27 = vpop.eup %1936  ;;  %v327_v28 = vmul.f32 1.442695, %v324_v25  ;;  %v457_v29 = vmul.f32 1.442695, %v455_v26  ;;  %v45_v25 = vld [vmem:[%s2543_s3 + $0x10] sm:$0xff]  ;;  %v44_v26 = vld [vmem:[%s2543_s3 + $0x8] sm:$0xff] }
 0x393   :  { %v329_v30 = vsel %vm129_vm1, %v1937_v27, 0.0  ;;  %707 = vmatpush.msrb.mxu2 %v45_v25 }
 0x394   :  { %1938 = vpow2.f32 %v327_v28  ;;  %330 = vadd.xlane.f32.xlu1 %v329_v30 }
 0x395   :  { %1940 = vpow2.f32 %v457_v29  ;;  %708 = vmatpush.msrb.mxu2 %v44_v26 }
 0x397   :  { %v583_v31 = vpop.xlane.xlu2 %582  ;;  %v454_v32 = vpop.xlane.xlu1 %453 }
 0x398   :  { %v587_v33 = vsub.f32 %v579_v12, %v583_v31  ;;  %v456_v34 = vsub.f32 %v448_v10, %v454_v32 }
 0x39a   :  { %v1939_v35 = vpop.eup %1938  ;;  %v589_v36 = vmul.f32 1.442695, %v587_v33  ;;  %v459_v37 = vmul.f32 1.442695, %v456_v34 }
 0x39b   :  { %v1941_v38 = vpop.eup %1940  ;;  %v332_v39 = vsel %vm129_vm1, %v1939_v35, 0.0 }
 0x39c   :  { %1942 = vpow2.f32 %v589_v36  ;;  %333 = vadd.xlane.f32.xlu2 %v332_v39  ;;  %v461_v40 = vsel %vm129_vm1, %v1941_v38, 0.0 }
 0x39d   :  { %1944 = vpow2.f32 %v459_v37  ;;  %462 = vadd.xlane.f32.xlu0 %v461_v40 }
 0x39f   :  { %v586_v41 = vpop.xlane.xlu0 %585 }
 0x3a0   :  { %v588_v42 = vsub.f32 %v580_v18, %v586_v41 }
 0x3a2   :  { %v1943_v43 = vpop.eup %1942  ;;  %v591_v44 = vmul.f32 1.442695, %v588_v42 }
 0x3a3   :  { %v1945_v45 = vpop.eup %1944  ;;  %v593_v46 = vsel %vm129_vm1, %v1943_v43, 0.0 }
 0x3a4   :  { %1946 = vpow2.f32 %v591_v44  ;;  %v464_v47 = vsel %vm129_vm1, %v1945_v45, 0.0 }
 0x3a5   :  { %594 = vadd.xlane.f32.xlu0 %v593_v46  ;;  %465 = vadd.xlane.f32.xlu2 %v464_v47 }
 0x3aa   :  { %v1947_v48 = vpop.eup %1946 }
 0x3ab   :  { %v596_v49 = vsel %vm129_vm1, %v1947_v48, 0.0 }
 0x3ad   :  { %597 = vadd.xlane.f32.xlu0 %v596_v49  ;;  %629 = vrot.lane.b32.xlu1 %v2132_v15, %s2023_s18 }
 0x3af   :  { %v1906_v50 = vpop.permute.xlu1 %1905 }
 0x3b0   :  { %v1907_v51 = vunpack.i.l.bf16 %v1906_v50  ;;  %v1908_v52 = vunpack.i.h.bf16 %v1906_v50 }
 0x3b2   :  { %360 = vmatpush.msrb.mxu0 %v1907_v51  ;;  %386 = vmatpush.msrb.mxu1 %v1908_v52 }
 0x3bd   :  { %1910 = vrot.lane.b32.xlu2 %v2139_v17, %s2024_s19 }
 0x3c1   :  { %603 = vrot.lane.b32.xlu0 %v2127_v11, %s2023_s18 }
 0x407   :  { %v331_v53 = vpop.xlane.xlu1 %330 }
 0x408   :  { %1948 = vrcp.f32 %v331_v53 }
 0x40e   :  { %v1949_v54 = vpop.eup %1948 }
 0x40f   :  { %v334_v55 = vpop.xlane.xlu2 %333  ;;  %v337_v56 = vmul.f32 %v1949_v54, %v1937_v27  ;;  %v43_v27 = vld [vmem:[%s2543_s3] sm:$0xff] }
 0x410   :  { %v463_v59 = vpop.xlane.xlu0 %462  ;;  %1950 = vrcp.f32 %v334_v55  ;;  %709 = vmatpush.msrb.mxu2 %v43_v27 }
 0x411   :  { %1807 = vmatmul.msk.f32.vlgmr.msrb.gmra.mxu0 %vm129_vm1, %v337_v56  ;;  %1952 = vrcp.f32 %v463_v59 }
 0x416   :  { %v1951_v15 = vpop.eup %1950 }
 0x417   :  { %v338_v60 = vmul.f32 %v1951_v15, %v1939_v35  ;;  %v1953_v17 = vpop.eup %1952 }
 0x418   :  { %v595_v61 = vpop.xlane.xlu0 %594  ;;  %v466_v62 = vpop.xlane.xlu2 %465  ;;  %v469_v3 = vmul.f32 %v1953_v17, %v1941_v38 }
 0x419   :  { %1808 = vmatmul.msk.f32.vlgmr.msrb.gmra.mxu1 %vm129_vm1, %v338_v60  ;;  %1954 = vrcp.f32 %v466_v62 }
 0x41f   :  { %v1955_v63 = vpop.eup %1954  ;;  %v630_v9 = vpop.permute.xlu1 %629 }
 0x420   :  { %v598_v11 = vpop.xlane.xlu0 %597  ;;  %v1911_v0 = vpop.permute.xlu2 %1910  ;;  %v470_v8 = vmul.f32 %v1955_v63, %v1945_v45  ;;  %v50_v63 = vld [vmem:[%s2546_s4 + $0x18] sm:$0xff] }
 0x421   :  { %1956 = vrcp.f32 %v598_v11  ;;  %v1913_v1 = vunpack.i.h.bf16 %v1911_v0  ;;  %v1912_v2 = vunpack.i.l.bf16 %v1911_v0  ;;  %v49_v11 = vld [vmem:[%s2546_s4 + $0x10] sm:$0xff]  ;;  %v48_v0 = vld [vmem:[%s2546_s4 + $0x8] sm:$0xff] }
 0x422   :  { %1958 = vrcp.f32 %v595_v61 }
 0x423   :  { %492 = vmatpush.msra.mxu0 %v1912_v2  ;;  %518 = vmatpush.msra.mxu1 %v1913_v1  ;;  %v47_v1 = vld [vmem:[%s2546_s4] sm:$0xff] }
 0x424   :  { %1813 = vmatmul.msk.f32.vlgmr.msra.gmra.mxu0 %vm129_vm1, %v469_v3  ;;  %1814 = vmatmul.msk.f32.vlgmr.msra.gmra.mxu1 %vm129_vm1, %v470_v8 }
 0x425   :  { %650 = vmatpush.msrb.mxu1 %v630_v9  ;;  %v58_v9 = vld [vmem:[%s2547_s5 + $0x38] sm:$0xff] }
 0x427   :  { %v1957_v10 = vpop.eup %1956 }
 0x428   :  { %v602_v12 = vmul.f32 %v1957_v10, %v1947_v48  ;;  %v1959_v13 = vpop.eup %1958  ;;  %v2028_v48 = vmov 32.0   ;;  %v57_v10 = vld [vmem:[%s2547_s5 + $0x30] sm:$0xff] }
 0x429   :  { %v601_v14 = vmul.f32 %v1959_v13, %v1943_v43  ;;  %1960 = vrcp.f32 %v2028_v48 }
 0x42c   :  { %1820 = vmatmul.msk.f32.vlgmr.msrb.gmra.mxu1 %vm129_vm1, %v602_v12  ;;  %v56_v12 = vld [vmem:[%s2547_s5 + $0x28] sm:$0xff] }
 0x42f   :  { %v1961_v49 = vpop.eup %1960 }
 0x430   :  { %v726_v50 = vmul.f32 32.0, %v1961_v49  ;;  %vm730_vm4 = vweird.f32 %v1961_v49 }
 0x432   :  { %v727_v51 = vsub.f32 1.0, %v726_v50 }
 0x433   :  { %v604_v16 = vpop.permute.xlu0 %603 }
 0x434   :  { %624 = vmatpush.msrb.mxu0 %v604_v16  ;;  %v728_v52 = vmul.f32 %v1961_v49, %v727_v51  ;;  %v55_v16 = vld [vmem:[%s2547_s5 + $0x20] sm:$0xff] }
 0x435   :  { %1819 = vmatmul.msk.f32.vlgmr.msrb.gmra.mxu0 %vm129_vm1, %v601_v14 }
 0x436   :  { %v729_v53 = vadd.f32 %v1961_v49, %v728_v52  ;;  %797 = vmatpush.msra.mxu0 %v50_v63 }
 0x438   :  { %v2243_v54 = vsel %vm730_vm4, %v1961_v49, %v729_v53  ;;  %798 = vmatpush.msra.mxu0 %v49_v11 }
 0x43a   :  { %799 = vmatpush.msra.mxu0 %v48_v0 }
 0x43c   :  { %800 = vmatpush.msra.mxu0 %v47_v1 }
 0x43e   :  { %826 = vmatpush.msrb.mxu0 %v58_v9  ;;  %v1829_v9 = vld [vmem:[%s2539_s2 + $0x30] sm:$0xff] }
 0x440   :  { %827 = vmatpush.msrb.mxu0 %v57_v10  ;;  %v1828_v10 = vld [vmem:[%s2539_s2 + $0x28] sm:$0xff] }
 0x442   :  { %828 = vmatpush.msrb.mxu0 %v56_v12  ;;  %v1827_v12 = vld [vmem:[%s2539_s2 + $0x20] sm:$0xff] }
 0x444   :  { %829 = vmatpush.msrb.mxu0 %v55_v16 }
 0x48e   :  { %v362_v18 = vpop.f32.mrf.mxu0 }
 0x48f   :  { %657 = vrot.lane.b32.xlu1 %v362_v18, %s2025_s20 }
 0x496   :  { %v388_v19 = vpop.f32.mrf.mxu1 }
 0x497   :  { %659 = vrot.lane.b32.xlu0 %v388_v19, %s2025_s20 }
 0x4a1   :  { %v494_v20 = vpop.f32.mrf.mxu0  ;;  %v520_v21 = vpop.f32.mrf.mxu1 }
 0x4a2   :  { %665 = vrot.lane.b32.xlu2 %v494_v20, %s2026_s21  ;;  %v54_v20 = vld [vmem:[%s2547_s5 + $0x18] sm:$0xff] }
 0x4a3   :  { %830 = vmatpush.msrb.mxu0 %v54_v20 }
 0x4a9   :  { %v652_v23 = vpop.f32.mrf.mxu1 }
 0x4aa   :  { %667 = vrot.lane.b32.xlu2 %v520_v21, %s2026_s21 }
 0x4b2   :  { %v626_v22 = vpop.f32.mrf.mxu0 }
 0x4b3   :  { %673 = vrot.lane.b32.xlu1 %v626_v22, %s2027_s22 }
 0x4bb   :  { %675 = vrot.lane.b32.xlu1 %v652_v23, %s2027_s22 }
 0x4fc   :  { %v666_v29 = vpop.permute.xlu2 %665 }
 0x501   :  { %v658_v28 = vpop.permute.xlu1 %657 }
 0x502   :  { %v679_v30 = vsel %vm129_vm1, %v2175_v57, %v658_v28  ;;  %v2236_v57 = vld [vmem:[%s2544_s8] sm:$0x3f] }
 0x503   :  { %v682_v31 = vsel %vm681_vm2, %v679_v30, %v666_v29  ;;  %v687_v40 = vperm.slane %v2236_v57, 0  ;;  %v770_v28 = vperm.slane %v2236_v57, 2  ;;  %v810_v51 = vperm.slane %v2236_v57, 1 }
 0x504   :  { %v668_v36 = vpop.permute.xlu2 %667 }
 0x509   :  { %v660_v34 = vpop.permute.xlu0 %659 }
 0x50a   :  { %v680_v35 = vsel %vm129_vm1, %v2177_v58, %v660_v34 }
 0x50b   :  { %v683_v38 = vsel %vm681_vm2, %v680_v35, %v668_v36 }
 0x525   :  { %v674_v32 = vpop.permute.xlu1 %673 }
 0x526   :  { %v685_v33 = vsel %vm684_vm3, %v682_v31, %v674_v32  ;;  %v773_v32 = vperm.slane %v2236_v57, 3 }
 0x527   :  { %1821 = vmatmul.msk.f32.vlgmr.msrb.gmra.mxu2 %vm65_vm0, %v685_v33 }
 0x52d   :  { %v676_v37 = vpop.permute.xlu1 %675 }
 0x52e   :  { %v686_v39 = vsel %vm684_vm3, %v683_v38, %v676_v37 }
 0x52f   :  { %1822 = vmatmul.msk.f32.gmra.mxu2 %vm65_vm0, %v686_v39 }
 0x5aa   :  { %v711_v41 = vpop.f32.mrf.mxu2 }
 0x5ab   :  { %v712_v42 = vadd.f32 %v711_v41, %v687_v40 }
 0x5ad   :  { %v717_v43 = vadd.f32 %v712_v42, %v2099_v4  ;;  %v53_v42 = vld [vmem:[%s2547_s5 + $0x10] sm:$0xff] }
 0x5ae   :  { %831 = vmatpush.msrb.mxu0 %v53_v42 }
 0x5af   :  { %v719_v58 = vsel %vm65_vm0, %v717_v43, 0.0 }
 0x5b0   :  { %720 = vadd.xlane.f32.xlu0 %v719_v58  ;;  %v51_v58 = vld [vmem:[%s2547_s5] sm:$0xff] }
 0x5b2   :  { %v714_v44 = vpop.f32.mrf.mxu2 }
 0x5b3   :  { %v715_v45 = vadd.f32 %v714_v44, %v687_v40  ;;  %v1925_v44 = vld [vmem:[%s2545_s7] ss:$0 sm:$0xff] }
 0x5b5   :  { %v718_v46 = vadd.f32 %v715_v45, %v2113_v6 }
 0x5b7   :  { %v722_v47 = vsel %vm65_vm0, %v718_v46, 0.0 }
 0x5b8   :  { %723 = vadd.xlane.f32.xlu2 %v722_v47 }
 0x623   :  { %v721_v4 = vpop.xlane.xlu0 %720 }
 0x624   :  { %v732_v55 = vmul.f32 %v2243_v54, %v721_v4 }
 0x626   :  { %v734_v56 = vsub.f32 %v717_v43, %v732_v55  ;;  %v52_v43 = vld [vmem:[%s2547_s5 + $0x8] sm:$0xff] }
 0x627   :  { %832 = vmatpush.msrb.mxu0 %v52_v43 }
 0x628   :  { %v736_v59 = vmul.f32 %v734_v56, %v734_v56 }
 0x629   :  { %833 = vmatpush.msrb.mxu0 %v51_v58 }
 0x62a   :  { %v738_v6 = vsel %vm65_vm0, %v736_v59, 0.0 }
 0x62b   :  { %739 = vadd.xlane.f32.xlu1 %v738_v6  ;;  %v724_v15 = vpop.xlane.xlu2 %723 }
 0x62c   :  { %v733_v60 = vmul.f32 %v2243_v54, %v724_v15 }
 0x62e   :  { %v735_v61 = vsub.f32 %v718_v46, %v733_v60 }
 0x630   :  { %v737_v62 = vmul.f32 %v735_v61, %v735_v61 }
 0x632   :  { %v741_v17 = vsel %vm65_vm0, %v737_v62, 0.0 }
 0x633   :  { %742 = vadd.xlane.f32.xlu0 %v741_v17 }
 0x69e   :  { %v740_v2 = vpop.xlane.xlu1 %739 }
 0x69f   :  { %v744_v3 = vmul.f32 %v740_v2, %v2243_v54 }
 0x6a1   :  { %v746_v8 = vadd.f32 1e-05, %v744_v3 }
 0x6a3   :  { %1962 = vrsqrt.f32 %v746_v8  ;;  %vm754_vm6 = vweird.f32 %v746_v8 }
 0x6a6   :  { %v743_v13 = vpop.xlane.xlu0 %742 }
 0x6a7   :  { %v745_v14 = vmul.f32 %v743_v13, %v2243_v54 }
 0x6a9   :  { %v1963_v18 = vpop.eup %1962  ;;  %v747_v19 = vadd.f32 1e-05, %v745_v14 }
 0x6aa   :  { %v749_v21 = vmul.f32 %v1963_v18, %v746_v8  ;;  %vm755_vm5 = vweird.f32 %v1963_v18  ;;  %v1830_v8 = vld [vmem:[%s2539_s2 + $0x38] sm:$0xff] }
 0x6ab   :  { %1964 = vrsqrt.f32 %v747_v19  ;;  %vm756_vm7 = vmor %vm754_vm6, %vm755_vm5  ;;  %vm764_vm9 = vweird.f32 %v747_v19  ;;  %967 = vmatpush.msra.mxu2 %v1830_v8  ;;  %944 = vmatpush.msra.mxu1 %v1830_v8 }
 0x6ac   :  { %v750_v22 = vmul.f32 %v1963_v18, %v749_v21 }
 0x6ad   :  { %968 = vmatpush.msra.mxu2 %v1829_v9  ;;  %945 = vmatpush.msra.mxu1 %v1829_v9 }
 0x6ae   :  { %v751_v23 = vmul.f32 0.5, %v750_v22 }
 0x6af   :  { %969 = vmatpush.msra.mxu2 %v1828_v10  ;;  %946 = vmatpush.msra.mxu1 %v1828_v10 }
 0x6b0   :  { %v752_v24 = vsub.f32 1.5, %v751_v23 }
 0x6b1   :  { %v1965_v25 = vpop.eup %1964  ;;  %970 = vmatpush.msra.mxu2 %v1827_v12  ;;  %947 = vmatpush.msra.mxu1 %v1827_v12 }
 0x6b2   :  { %v753_v26 = vmul.f32 %v1963_v18, %v752_v24  ;;  %v759_v27 = vmul.f32 %v1965_v25, %v747_v19  ;;  %vm765_vm8 = vweird.f32 %v1965_v25  ;;  %1852 = vmatmul.msk.f32.vlgmr.msra.gmra.mxu2 %vm65_vm0, %v2104_v5 }
 0x6b3   :  { %vm766_vm10 = vmor %vm764_vm9, %vm765_vm8 }
 0x6b4   :  { %v757_v29 = vsel %vm756_vm7, %v1963_v18, %v753_v26  ;;  %v760_v30 = vmul.f32 %v1965_v25, %v759_v27 }
 0x6b5   :  { %v768_v31 = vmul.f32 %v757_v29, %v734_v56 }
 0x6b6   :  { %v761_v33 = vmul.f32 0.5, %v760_v30 }
 0x6b7   :  { %v771_v34 = vmul.f32 %v770_v28, %v768_v31  ;;  %v890_v31 = vperm.slane %v2236_v57, 5 }
 0x6b8   :  { %v762_v35 = vsub.f32 1.5, %v761_v33 }
 0x6b9   :  { %v774_v36 = vadd.f32 %v773_v32, %v771_v34 }
 0x6ba   :  { %v763_v37 = vmul.f32 %v1965_v25, %v762_v35  ;;  %1853 = vmatmul.msk.f32.gmra.mxu2 %vm65_vm0, %v2118_v7 }
 0x6bb   :  { %1823 = vmatmul.msk.f32.vlgmr.msra.gmra.mxu0 %vm65_vm0, %v774_v36 }
 0x6bc   :  { %v767_v38 = vsel %vm766_vm10, %v1965_v25, %v763_v37 }
 0x6bd   :  { %v769_v39 = vmul.f32 %v767_v38, %v735_v61 }
 0x6bf   :  { %v772_v40 = vmul.f32 %v770_v28, %v769_v39  ;;  %v887_v28 = vperm.slane %v2236_v57, 4  ;;  %v1926_v57 = vld [vmem:[%s2540_s6 + $0x1] ss:$0 sm:$0xff] }
 0x6c1   :  { %v775_v41 = vadd.f32 %v773_v32, %v772_v40 }
 0x6c3   :  { %1824 = vmatmul.msk.f32.gmra.mxu0 %vm65_vm0, %v775_v41 }
 0x738   :  { %v802_v45 = vpop.f32.mrf.mxu0 }
 0x739   :  { %v803_v46 = vadd.f32 %v1925_v44, %v802_v45 }
 0x73b   :  { %v808_v47 = vmax.f32 %v803_v46, 0.0 }
 0x73d   :  { %1825 = vmatmul.msk.f32.vlgmr.msrb.gmra.mxu0 %vm811_vm11, %v808_v47 }
 0x740   :  { %v805_v48 = vpop.f32.mrf.mxu0 }
 0x741   :  { %v806_v49 = vadd.f32 %v1925_v44, %v805_v48 }
 0x743   :  { %v809_v50 = vmax.f32 %v806_v49, 0.0 }
 0x745   :  { %1826 = vmatmul.msk.f32.gmra.mxu0 %vm811_vm11, %v809_v50 }
 0x7ba   :  { %v835_v52 = vpop.f32.mrf.mxu0 }
 0x7bb   :  { %v836_v53 = vadd.f32 %v835_v52, %v810_v51 }
 0x7bd   :  { %v841_v4 = vadd.f32 %v836_v53, %v774_v36 }
 0x7bf   :  { %v843_v55 = vsel %vm65_vm0, %v841_v4, 0.0 }
 0x7c0   :  { %844 = vadd.xlane.f32.xlu2 %v843_v55 }
 0x7c2   :  { %v838_v56 = vpop.f32.mrf.mxu0 }
 0x7c3   :  { %v839_v59 = vadd.f32 %v838_v56, %v810_v51 }
 0x7c5   :  { %v842_v6 = vadd.f32 %v839_v59, %v775_v41  ;;  %v972_v41 = vpop.f32.mrf.mxu2 }
 0x7c7   :  { %v846_v15 = vsel %vm65_vm0, %v842_v6, 0.0 }
 0x7c8   :  { %847 = vadd.xlane.f32.xlu1 %v846_v15 }
 0x7cd   :  { %v975_v45 = vpop.f32.mrf.mxu2 }
 0x833   :  { %v845_v60 = vpop.xlane.xlu2 %844 }
 0x834   :  { %v849_v61 = vmul.f32 %v845_v60, %v2243_v54 }
 0x836   :  { %v851_v62 = vsub.f32 %v841_v4, %v849_v61 }
 0x838   :  { %v853_v17 = vmul.f32 %v851_v62, %v851_v62 }
 0x83a   :  { %v855_v63 = vsel %vm65_vm0, %v853_v17, 0.0 }
 0x83b   :  { %v848_v11 = vpop.xlane.xlu1 %847  ;;  %856 = vadd.xlane.f32.xlu0 %v855_v63 }
 0x83c   :  { %v850_v0 = vmul.f32 %v848_v11, %v2243_v54 }
 0x83e   :  { %v852_v1 = vsub.f32 %v842_v6, %v850_v0 }
 0x840   :  { %v854_v2 = vmul.f32 %v852_v1, %v852_v1 }
 0x842   :  { %v858_v3 = vsel %vm65_vm0, %v854_v2, 0.0 }
 0x843   :  { %859 = vadd.xlane.f32.xlu2 %v858_v3 }
 0x8ae   :  { %v857_v13 = vpop.xlane.xlu0 %856 }
 0x8af   :  { %v861_v14 = vmul.f32 %v857_v13, %v2243_v54 }
 0x8b1   :  { %v863_v16 = vadd.f32 1e-05, %v861_v14 }
 0x8b3   :  { %1966 = vrsqrt.f32 %v863_v16  ;;  %vm871_vm13 = vweird.f32 %v863_v16 }
 0x8b6   :  { %v860_v18 = vpop.xlane.xlu2 %859 }
 0x8b7   :  { %v862_v19 = vmul.f32 %v860_v18, %v2243_v54 }
 0x8b9   :  { %v1967_v20 = vpop.eup %1966  ;;  %v864_v21 = vadd.f32 1e-05, %v862_v19 }
 0x8ba   :  { %v866_v22 = vmul.f32 %v1967_v20, %v863_v16  ;;  %vm872_vm12 = vweird.f32 %v1967_v20 }
 0x8bb   :  { %1968 = vrsqrt.f32 %v864_v21  ;;  %vm873_vm14 = vmor %vm871_vm13, %vm872_vm12  ;;  %vm881_vm4 = vweird.f32 %v864_v21 }
 0x8bc   :  { %v867_v23 = vmul.f32 %v1967_v20, %v866_v22 }
 0x8be   :  { %v868_v24 = vmul.f32 0.5, %v867_v23 }
 0x8c0   :  { %v869_v25 = vsub.f32 1.5, %v868_v24 }
 0x8c1   :  { %v1969_v5 = vpop.eup %1968 }
 0x8c2   :  { %v870_v26 = vmul.f32 %v1967_v20, %v869_v25  ;;  %v876_v27 = vmul.f32 %v1969_v5, %v864_v21  ;;  %vm882_vm15 = vweird.f32 %v1969_v5 }
 0x8c3   :  { %vm883_vm5 = vmor %vm881_vm4, %vm882_vm15 }
 0x8c4   :  { %v874_v7 = vsel %vm873_vm14, %v1967_v20, %v870_v26  ;;  %v877_v29 = vmul.f32 %v1969_v5, %v876_v27 }
 0x8c5   :  { %v885_v30 = vmul.f32 %v874_v7, %v851_v62 }
 0x8c6   :  { %v878_v32 = vmul.f32 0.5, %v877_v29 }
 0x8c7   :  { %v888_v33 = vmul.f32 %v887_v28, %v885_v30 }
 0x8c8   :  { %v879_v34 = vsub.f32 1.5, %v878_v32 }
 0x8c9   :  { %v2323_v35 = vadd.f32 %v890_v31, %v888_v33 }
 0x8ca   :  { %v880_v36 = vmul.f32 %v1969_v5, %v879_v34 }
 0x8cb   :  { %1850 = vmatmul.msk.f32.vlgmr.msra.gmra.mxu1 %vm65_vm0, %v2323_v35 }
 0x8cc   :  { %v884_v37 = vsel %vm883_vm5, %v1969_v5, %v880_v36 }
 0x8cd   :  { %v886_v38 = vmul.f32 %v884_v37, %v852_v1 }
 0x8cf   :  { %v889_v39 = vmul.f32 %v887_v28, %v886_v38 }
 0x8d1   :  { %v2327_v40 = vadd.f32 %v890_v31, %v889_v39 }
 0x8d3   :  { %1851 = vmatmul.msk.f32.gmra.mxu1 %vm65_vm0, %v2327_v40 }
 0x948   :  { %v949_v42 = vpop.f32.mrf.mxu1 }
 0x949   :  { %v2334_v43 = vadd.f32 %v1926_v57, %v949_v42 }
 0x94b   :  { %v978_v58 = vadd.f32 %v972_v41, %v2334_v43 }
 0x94d   :  { %1114 = vrot.lane.b32.xlu2 %v978_v58, %s2018_s13  ;;  %981 = vrot.lane.b32.xlu1 %v978_v58, %s2015_s1 }
 0x950   :  { %v952_v44 = vpop.f32.mrf.mxu1 }
 0x951   :  { %v2339_v46 = vadd.f32 %v1926_v57, %v952_v44 }
 0x953   :  { %v979_v47 = vadd.f32 %v975_v45, %v2339_v46  ;;  %v1919_v26 = vpack.i.bf16 %v2339_v46, %v2334_v43 }
 0x955   :  { %1246 = vrot.lane.b32.xlu2 %v978_v58, %s2019_s14  ;;  %1142 = vrot.lane.b32.xlu1 %v979_v47, %s2018_s13 }
 0x956   :  { %1008 = vrot.lane.b32.xlu0 %v979_v47, %s2015_s1 }
 0x95d   :  { %1274 = vrot.lane.b32.xlu2 %v979_v47, %s2019_s14  ;;  %1244 = vrot.lane.b32.xlu1 %v978_v58, %s2016_s11 }
 0x95e   :  { %1112 = vrot.lane.b32.xlu0 %v978_v58, %s2014_s0 }
 0x965   :  { %1376 = vrot.lane.b32.xlu2 %v978_v58, %s2021_s16  ;;  %1272 = vrot.lane.b32.xlu1 %v979_v47, %s2016_s11 }
 0x966   :  { %1140 = vrot.lane.b32.xlu0 %v979_v47, %s2014_s0 }
 0x96d   :  { %1404 = vrot.lane.b32.xlu1 %v979_v47, %s2021_s16 }
 0x96e   :  { %1378 = vrot.lane.b32.xlu0 %v978_v58, %s2020_s15 }
 0x976   :  { %1406 = vrot.lane.b32.xlu0 %v979_v47, %s2020_s15 }
 0x9a7   :  { %v1115_v48 = vpop.permute.xlu2 %1114 }
 0x9af   :  { %v1247_v49 = vpop.permute.xlu2 %1246 }
 0x9b7   :  { %v1275_v52 = vpop.permute.xlu2 %1274 }
 0x9bf   :  { %v982_v50 = vpop.permute.xlu1 %981  ;;  %v1377_v15 = vpop.permute.xlu2 %1376 }
 0x9c0   :  { %1854 = vmatpush.xpose.msk.msrb.mxu3 %vm129_vm1, %v982_v50 }
 0x9c3   :  { %1855 = vmatmul.msk.f32.vlgmr.msrb.gmra.mxu3 %vm129_vm1, %v978_v58 }
 0x9c7   :  { %v1143_v51 = vpop.permute.xlu1 %1142 }
 0x9c8   :  { %v1009_v53 = vpop.permute.xlu0 %1008  ;;  %1862 = vmatpush.xpose.msk.msrb.mxu2 %vm129_vm1, %v1143_v51 }
 0x9c9   :  { %1856 = vmatpush.xpose.msk.msrb.mxu1 %vm129_vm1, %v1009_v53 }
 0x9cc   :  { %1868 = vmatpush.xpose.msk.msra.mxu2 %vm129_vm1, %v1275_v52  ;;  %1857 = vmatmul.msk.f32.vlgmr.msrb.gmra.mxu1 %vm129_vm1, %v979_v47 }
 0x9cd   :  { %1860 = vmatpush.xpose.msk.msra.mxu1 %vm129_vm1, %v1115_v48 }
 0x9cf   :  { %v1245_v55 = vpop.permute.xlu1 %1244 }
 0x9d0   :  { %v1113_v4 = vpop.permute.xlu0 %1112 }
 0x9d1   :  { %1866 = vmatpush.xpose.msk.msrb.mxu1 %vm129_vm1, %v1247_v49 }
 0x9d4   :  { %1861 = vmatmul.msk.f32.vlgmr.msra.gmra.mxu1 %vm129_vm1, %v1113_v4 }
 0x9d7   :  { %v1273_v59 = vpop.permute.xlu1 %1272 }
 0x9d8   :  { %v1141_v56 = vpop.permute.xlu0 %1140 }
 0x9d9   :  { %1863 = vmatmul.msk.f32.vlgmr.msrb.gmra.mxu2 %vm129_vm1, %v1141_v56 }
 0x9dc   :  { %1867 = vmatmul.msk.f32.vlgmr.msrb.gmra.mxu1 %vm129_vm1, %v1245_v55 }
 0x9df   :  { %v1405_v61 = vpop.permute.xlu1 %1404 }
 0x9e0   :  { %v1379_v6 = vpop.permute.xlu0 %1378 }
 0x9e1   :  { %1869 = vmatmul.msk.f32.vlgmr.msra.gmra.mxu2 %vm129_vm1, %v1273_v59  ;;  %1872 = vmatpush.xpose.msk.msra.mxu1 %vm129_vm1, %v1379_v6 }
 0x9e4   :  { %1873 = vmatmul.msk.f32.vlgmr.msra.gmra.mxu1 %vm129_vm1, %v1377_v15 }
 0x9e8   :  { %v1407_v60 = vpop.permute.xlu0 %1406 }
 0x9e9   :  { %1874 = vmatpush.xpose.msk.msrb.mxu2 %vm129_vm1, %v1407_v60 }
 0x9ec   :  { %1875 = vmatmul.msk.f32.vlgmr.msrb.gmra.mxu2 %vm129_vm1, %v1405_v61 }
 0xa46   :  { %v1004_v62 = vpop.f32.mrf.mxu3 }
 0xa47   :  { %v1034_v17 = vmul.f32 0.35355338, %v1004_v62 }
 0xa49   :  { %v1031_v63 = vpop.f32.mrf.mxu1  ;;  %v1036_v11 = vsel %vm129_vm1, %v1034_v17, -inf }
 0xa4a   :  { %v1035_v0 = vmul.f32 0.35355338, %v1031_v63  ;;  %1037 = vmax.xlane.f32.xlu2 %v1036_v11 }
 0xa4c   :  { %v1039_v1 = vsel %vm129_vm1, %v1035_v0, -inf }
 0xa4d   :  { %1040 = vmax.xlane.f32.xlu1 %v1039_v1 }
 0xa51   :  { %v1137_v2 = vpop.f32.mrf.mxu1 }
 0xa52   :  { %v1168_v14 = vmul.f32 0.35355338, %v1137_v2 }
 0xa54   :  { %v1170_v20 = vsel %vm129_vm1, %v1168_v14, -inf }
 0xa59   :  { %v1269_v3 = vpop.f32.mrf.mxu1 }
 0xa5a   :  { %v1300_v22 = vmul.f32 0.35355338, %v1269_v3 }
 0xa5c   :  { %v1165_v8 = vpop.f32.mrf.mxu2  ;;  %v1302_v24 = vsel %vm129_vm1, %v1300_v22, -inf }
 0xa5d   :  { %v1169_v9 = vmul.f32 0.35355338, %v1165_v8 }
 0xa5f   :  { %v1173_v10 = vsel %vm129_vm1, %v1169_v9, -inf }
 0xa60   :  { %1174 = vmax.xlane.f32.xlu0 %v1173_v10 }
 0xa61   :  { %v1401_v12 = vpop.f32.mrf.mxu1 }
 0xa62   :  { %v1432_v13 = vmul.f32 0.35355338, %v1401_v12 }
 0xa64   :  { %v1297_v16 = vpop.f32.mrf.mxu2  ;;  %v1434_v18 = vsel %vm129_vm1, %v1432_v13, -inf }
 0xa65   :  { %v1301_v19 = vmul.f32 0.35355338, %v1297_v16  ;;  %1435 = vmax.xlane.f32.xlu1 %v1434_v18 }
 0xa67   :  { %v1305_v21 = vsel %vm129_vm1, %v1301_v19, -inf }
 0xa68   :  { %1171 = vmax.xlane.f32.xlu0 %v1170_v20  ;;  %1306 = vmax.xlane.f32.xlu2 %v1305_v21 }
 0xa6f   :  { %v1429_v23 = vpop.f32.mrf.mxu2 }
 0xa70   :  { %v2377_v25 = vmul.f32 0.35355338, %v1429_v23  ;;  %1303 = vmax.xlane.f32.xlu2 %v1302_v24 }
 0xa72   :  { %v1437_v5 = vsel %vm129_vm1, %v2377_v25, -inf }
 0xa73   :  { %1438 = vmax.xlane.f32.xlu0 %v1437_v5 }
 0xa7e   :  { %1920 = vrot.lane.b32.xlu1 %v1919_v26, %s2022_s17 }
 0xa87   :  { %1915 = vrot.lane.b32.xlu0 %v1919_v26, %s2017_s12 }
 0xa88   :  { %1324 = vrot.lane.b32.xlu2 %v2334_v43, %s2024_s19 }
 0xabd   :  { %v1038_v27 = vpop.xlane.xlu2 %1037 }
 0xabe   :  { %v1042_v28 = vsub.f32 %v1034_v17, %v1038_v27 }
 0xac0   :  { %v1044_v7 = vmul.f32 1.442695, %v1042_v28  ;;  %v1041_v29 = vpop.xlane.xlu1 %1040 }
 0xac1   :  { %v1043_v30 = vsub.f32 %v1035_v0, %v1041_v29 }
 0xac2   :  { %1970 = vpow2.f32 %v1044_v7 }
 0xac3   :  { %v1046_v31 = vmul.f32 1.442695, %v1043_v30 }
 0xac5   :  { %1972 = vpow2.f32 %v1046_v31 }
 0xac8   :  { %v2387_v32 = vpop.eup %1970 }
 0xac9   :  { %v1048_v33 = vsel %vm129_vm1, %v2387_v32, 0.0 }
 0xaca   :  { %1049 = vadd.xlane.f32.xlu1 %v1048_v33 }
 0xacb   :  { %v2391_v34 = vpop.eup %1972 }
 0xacc   :  { %v1051_v36 = vsel %vm129_vm1, %v2391_v34, 0.0 }
 0xad2   :  { %1052 = vadd.xlane.f32.xlu1 %v1051_v36 }
 0xad3   :  { %v1175_v37 = vpop.xlane.xlu0 %1174 }
 0xad4   :  { %v1177_v38 = vsub.f32 %v1169_v9, %v1175_v37 }
 0xad6   :  { %v1180_v39 = vmul.f32 1.442695, %v1177_v38 }
 0xad8   :  { %1974 = vpow2.f32 %v1180_v39  ;;  %v1436_v57 = vpop.xlane.xlu1 %1435 }
 0xad9   :  { %v1440_v41 = vsub.f32 %v1432_v13, %v1436_v57 }
 0xadb   :  { %v1442_v42 = vmul.f32 1.442695, %v1440_v41  ;;  %v1172_v58 = vpop.xlane.xlu0 %1171  ;;  %v1307_v44 = vpop.xlane.xlu2 %1306 }
 0xadc   :  { %v1176_v45 = vsub.f32 %v1168_v14, %v1172_v58  ;;  %v1309_v47 = vsub.f32 %v1301_v19, %v1307_v44 }
 0xadd   :  { %1976 = vpow2.f32 %v1442_v42 }
 0xade   :  { %v1975_v48 = vpop.eup %1974  ;;  %v1178_v49 = vmul.f32 1.442695, %v1176_v45  ;;  %v1312_v50 = vmul.f32 1.442695, %v1309_v47 }
 0xadf   :  { %v1185_v51 = vsel %vm129_vm1, %v1975_v48, 0.0 }
 0xae0   :  { %1978 = vpow2.f32 %v1178_v49  ;;  %1186 = vadd.xlane.f32.xlu2 %v1185_v51  ;;  %v1834_v49 = vld [vmem:[%s2543_s3 + $0x38] sm:$0xff]  ;;  %v1832_v51 = vld [vmem:[%s2543_s3 + $0x28] sm:$0xff] }
 0xae1   :  { %1980 = vpow2.f32 %v1312_v50  ;;  %v1833_v50 = vld [vmem:[%s2543_s3 + $0x30] sm:$0xff]  ;;  %1557 = vmatpush.msrb.mxu1 %v1834_v49 }
 0xae3   :  { %v2396_v52 = vpop.eup %1976  ;;  %v1304_v53 = vpop.xlane.xlu2 %1303  ;;  %1558 = vmatpush.msrb.mxu1 %v1833_v50 }
 0xae4   :  { %v1308_v4 = vsub.f32 %v1300_v22, %v1304_v53  ;;  %v1446_v55 = vsel %vm129_vm1, %v2396_v52, 0.0 }
 0xae5   :  { %1447 = vadd.xlane.f32.xlu0 %v1446_v55  ;;  %1559 = vmatpush.msrb.mxu1 %v1832_v51 }
 0xae6   :  { %v1979_v56 = vpop.eup %1978  ;;  %v1310_v59 = vmul.f32 1.442695, %v1308_v4  ;;  %v1439_v17 = vpop.xlane.xlu0 %1438 }
 0xae7   :  { %v1981_v6 = vpop.eup %1980  ;;  %v1182_v15 = vsel %vm129_vm1, %v1979_v56, 0.0  ;;  %v1441_v8 = vsub.f32 %v2377_v25, %v1439_v17 }
 0xae8   :  { %1982 = vpow2.f32 %v1310_v59  ;;  %1183 = vadd.xlane.f32.xlu2 %v1182_v15  ;;  %v1317_v60 = vsel %vm129_vm1, %v1981_v6, 0.0 }
 0xae9   :  { %1318 = vadd.xlane.f32.xlu1 %v1317_v60  ;;  %v1444_v9 = vmul.f32 1.442695, %v1441_v8 }
 0xaeb   :  { %1984 = vpow2.f32 %v1444_v9  ;;  %v1325_v19 = vpop.permute.xlu2 %1324 }
 0xaee   :  { %v1983_v61 = vpop.eup %1982 }
 0xaef   :  { %v1314_v62 = vsel %vm129_vm1, %v1983_v61, 0.0 }
 0xaf0   :  { %1315 = vadd.xlane.f32.xlu2 %v1314_v62  ;;  %v1921_v63 = vpop.permute.xlu1 %1920 }
 0xaf1   :  { %v1923_v2 = vunpack.i.h.bf16 %v1921_v63  ;;  %v1922_v3 = vunpack.i.l.bf16 %v1921_v63  ;;  %v1985_v10 = vpop.eup %1984 }
 0xaf2   :  { %v1449_v12 = vsel %vm129_vm1, %v1985_v10, 0.0 }
 0xaf9   :  { %v1916_v11 = vpop.permute.xlu0 %1915  ;;  %1350 = vrot.lane.b32.xlu0 %v2339_v46, %s2024_s19 }
 0xafa   :  { %v1918_v0 = vunpack.i.h.bf16 %v1916_v11  ;;  %v1917_v1 = vunpack.i.l.bf16 %v1916_v11  ;;  %v2451_v11 = vld [vmem:[%s2544_s8 + $0x8] sm:$0x3f] }
 0xafc   :  { %1080 = vmatpush.msra.mxu3 %v1917_v1  ;;  %1107 = vmatpush.msra.mxu0 %v1918_v0  ;;  %v1538_v0 = vperm.slane %v2451_v11, 0 }
 0xafe   :  { %1213 = vmatpush.msrb.mxu3 %v1922_v3  ;;  %1239 = vmatpush.msrb.mxu0 %v1923_v2 }
 0xb02   :  { %1482 = vrot.lane.b32.xlu1 %v2339_v46, %s2023_s18 }
 0xb08   :  { %1456 = vrot.lane.b32.xlu2 %v2334_v43, %s2023_s18 }
 0xb31   :  { %1450 = vadd.xlane.f32.xlu2 %v1449_v12 }
 0xb3d   :  { %v1050_v13 = vpop.xlane.xlu1 %1049 }
 0xb3e   :  { %1986 = vrcp.f32 %v1050_v13 }
 0xb44   :  { %v1987_v14 = vpop.eup %1986 }
 0xb45   :  { %v1056_v16 = vmul.f32 %v1987_v14, %v2387_v32  ;;  %v1053_v18 = vpop.xlane.xlu1 %1052 }
 0xb46   :  { %1988 = vrcp.f32 %v1053_v18 }
 0xb47   :  { %1858 = vmatmul.msk.f32.vlgmr.msra.gmra.mxu3 %vm129_vm1, %v1056_v16 }
 0xb48   :  { %1345 = vmatpush.msra.mxu3 %v1325_v19 }
 0xb4c   :  { %v1989_v43 = vpop.eup %1988 }
 0xb4d   :  { %v1057_v46 = vmul.f32 %v1989_v43, %v2391_v34 }
 0xb4f   :  { %1859 = vmatmul.msk.f32.vlgmr.msra.gmra.mxu0 %vm129_vm1, %v1057_v46 }
 0xb53   :  { %v1187_v20 = vpop.xlane.xlu2 %1186 }
 0xb54   :  { %1990 = vrcp.f32 %v1187_v20 }
 0xb58   :  { %v1448_v5 = vpop.xlane.xlu0 %1447 }
 0xb5a   :  { %v1991_v21 = vpop.eup %1990 }
 0xb5b   :  { %v1191_v22 = vmul.f32 %v1991_v21, %v1975_v48  ;;  %v1184_v23 = vpop.xlane.xlu2 %1183 }
 0xb5c   :  { %1992 = vrcp.f32 %v1184_v23  ;;  %v1319_v24 = vpop.xlane.xlu1 %1318  ;;  %v1837_v23 = vld [vmem:[%s2546_s4 + $0x30] sm:$0xff] }
 0xb5d   :  { %1865 = vmatmul.msk.f32.vlgmr.msrb.gmra.mxu0 %vm129_vm1, %v1191_v22  ;;  %1994 = vrcp.f32 %v1319_v24  ;;  %v1836_v24 = vld [vmem:[%s2546_s4 + $0x28] sm:$0xff] }
 0xb62   :  { %v1993_v25 = vpop.eup %1992 }
 0xb63   :  { %v1190_v26 = vmul.f32 %v1993_v25, %v1979_v56  ;;  %v1316_v27 = vpop.xlane.xlu2 %1315  ;;  %v1995_v28 = vpop.eup %1994  ;;  %v1835_v25 = vld [vmem:[%s2546_s4 + $0x20] sm:$0xff] }
 0xb64   :  { %1996 = vrcp.f32 %v1316_v27  ;;  %v1323_v29 = vmul.f32 %v1995_v28, %v1981_v6 }
 0xb65   :  { %1864 = vmatmul.msk.f32.vlgmr.msrb.gmra.mxu3 %vm129_vm1, %v1190_v26  ;;  %1998 = vrcp.f32 %v1448_v5 }
 0xb6a   :  { %v1997_v7 = vpop.eup %1996 }
 0xb6b   :  { %v1322_v30 = vmul.f32 %v1997_v7, %v1983_v61  ;;  %v1351_v31 = vpop.permute.xlu0 %1350  ;;  %v1457_v32 = vpop.permute.xlu2 %1456 }
 0xb6c   :  { %1371 = vmatpush.msra.mxu0 %v1351_v31  ;;  %1477 = vmatpush.msrb.mxu3 %v1457_v32  ;;  %v1999_v33 = vpop.eup %1998 }
 0xb6d   :  { %1870 = vmatmul.msk.f32.vlgmr.msra.gmra.mxu3 %vm129_vm1, %v1322_v30  ;;  %1871 = vmatmul.msk.f32.vlgmr.msra.gmra.mxu0 %vm129_vm1, %v1323_v29  ;;  %v1454_v34 = vmul.f32 %v1999_v33, %v2396_v52  ;;  %v1831_v52 = vld [vmem:[%s2543_s3 + $0x20] sm:$0xff]  ;;  %v1614_v33 = vperm.slane %v2451_v11, 2 }
 0xb6e   :  { %1560 = vmatpush.msrb.mxu1 %v1831_v52 }
 0xb74   :  { %v1483_v36 = vpop.permute.xlu1 %1482 }
 0xb75   :  { %1503 = vmatpush.msrb.mxu0 %v1483_v36  ;;  %1876 = vmatmul.msk.f32.vlgmr.msrb.gmra.mxu3 %vm129_vm1, %v1454_v34 }
 0xba4   :  { %v1451_v37 = vpop.xlane.xlu2 %1450 }
 0xba5   :  { %2000 = vrcp.f32 %v1451_v37  ;;  %v1617_v37 = vperm.slane %v2451_v11, 3 }
 0xbab   :  { %v2001_v38 = vpop.eup %2000 }
 0xbac   :  { %v1455_v39 = vmul.f32 %v2001_v38, %v1985_v10 }
 0xbae   :  { %1877 = vmatmul.msk.f32.vlgmr.msrb.gmra.mxu0 %vm129_vm1, %v1455_v39 }
 0xbca   :  { %v1082_v41 = vpop.f32.mrf.mxu3 }
 0xbcc   :  { %v1109_v57 = vpop.f32.mrf.mxu0 }
 0xbda   :  { %v1241_v42 = vpop.f32.mrf.mxu0 }
 0xbe8   :  { %v1215_v58 = vpop.f32.mrf.mxu3 }
 0xbe9   :  { %1510 = vrot.lane.b32.xlu0 %v1215_v58, %s2025_s20 }
 0xbea   :  { %v1373_v44 = vpop.f32.mrf.mxu0 }
 0xbeb   :  { %1520 = vrot.lane.b32.xlu1 %v1373_v44, %s2026_s21 }
 0xbf0   :  { %v1347_v45 = vpop.f32.mrf.mxu3 }
 0xbf1   :  { %1518 = vrot.lane.b32.xlu0 %v1347_v45, %s2026_s21  ;;  %v1843_v45 = vld [vmem:[%s2547_s5 + $0x60] sm:$0xff] }
 0xbf8   :  { %v1479_v47 = vpop.f32.mrf.mxu3 }
 0xbf9   :  { %1512 = vrot.lane.b32.xlu0 %v1241_v42, %s2025_s20  ;;  %1526 = vrot.lane.b32.xlu2 %v1479_v47, %s2027_s22  ;;  %v1844_v42 = vld [vmem:[%s2547_s5 + $0x68] sm:$0xff] }
 0xc2b   :  { %v1505_v48 = vpop.f32.mrf.mxu0 }
 0xc2c   :  { %1528 = vrot.lane.b32.xlu0 %v1505_v48, %s2027_s22  ;;  %v1842_v48 = vld [vmem:[%s2547_s5 + $0x58] sm:$0xff] }
 0xc53   :  { %v1527_v56 = vpop.permute.xlu2 %1526 }
 0xc5b   :  { %v1511_v53 = vpop.permute.xlu0 %1510 }
 0xc5c   :  { %v1532_v4 = vsel %vm129_vm1, %v1082_v41, %v1511_v53  ;;  %v1845_v41 = vld [vmem:[%s2547_s5 + $0x70] sm:$0xff] }
 0xc5d   :  { %v1521_v61 = vpop.permute.xlu1 %1520 }
 0xc63   :  { %v1519_v55 = vpop.permute.xlu0 %1518 }
 0xc64   :  { %v1534_v59 = vsel %vm681_vm2, %v1532_v4, %v1519_v55 }
 0xc65   :  { %v1536_v6 = vsel %vm684_vm3, %v1534_v59, %v1527_v56 }
 0xc66   :  { %1878 = vmatmul.msk.f32.vlgmr.msrb.gmra.mxu1 %vm65_vm0, %v1536_v6 }
 0xc6b   :  { %v1513_v15 = vpop.permute.xlu0 %1512 }
 0xc6c   :  { %v1533_v60 = vsel %vm129_vm1, %v1109_v57, %v1513_v15  ;;  %v1846_v57 = vld [vmem:[%s2547_s5 + $0x78] sm:$0xff]  ;;  %v1841_v15 = vld [vmem:[%s2547_s5 + $0x50] sm:$0xff] }
 0xc6d   :  { %v1535_v17 = vsel %vm681_vm2, %v1533_v60, %v1521_v61  ;;  %1669 = vmatpush.msra.mxu3 %v1846_v57  ;;  %v1840_v60 = vld [vmem:[%s2547_s5 + $0x48] sm:$0xff]  ;;  %v1839_v61 = vld [vmem:[%s2547_s5 + $0x40] sm:$0xff] }
 0xc6f   :  { %1670 = vmatpush.msra.mxu3 %v1845_v41 }
 0xc71   :  { %1671 = vmatpush.msra.mxu3 %v1844_v42 }
 0xc73   :  { %1672 = vmatpush.msra.mxu3 %v1843_v45 }
 0xc75   :  { %1673 = vmatpush.msra.mxu3 %v1842_v48 }
 0xc77   :  { %1674 = vmatpush.msra.mxu3 %v1841_v15 }
 0xc79   :  { %1675 = vmatpush.msra.mxu3 %v1840_v60 }
 0xc7b   :  { %1676 = vmatpush.msra.mxu3 %v1839_v61 }
 0xc9e   :  { %v1529_v62 = vpop.permute.xlu0 %1528 }
 0xc9f   :  { %v1537_v63 = vsel %vm684_vm3, %v1535_v17, %v1529_v62  ;;  %v1927_v62 = vld [vmem:[%s2545_s7 + $0x1] ss:$0 sm:$0xff] }
 0xca0   :  { %1879 = vmatmul.msk.f32.gmra.mxu1 %vm65_vm0, %v1537_v63 }
 0xce3   :  { %v1562_v1 = vpop.f32.mrf.mxu1 }
 0xce4   :  { %v1563_v2 = vadd.f32 %v1562_v1, %v1538_v0 }
 0xce6   :  { %v1568_v3 = vadd.f32 %v1563_v2, %v2323_v35 }
 0xce8   :  { %v1570_v8 = vsel %vm65_vm0, %v1568_v3, 0.0 }
 0xce9   :  { %1571 = vadd.xlane.f32.xlu1 %v1570_v8  ;;  %v1654_v8 = vperm.slane %v2451_v11, 1 }
 0xd1d   :  { %v1565_v9 = vpop.f32.mrf.mxu1 }
 0xd1e   :  { %v1566_v10 = vadd.f32 %v1565_v9, %v1538_v0 }
 0xd20   :  { %v1569_v12 = vadd.f32 %v1566_v10, %v2327_v40  ;;  %v1838_v40 = vld [vmem:[%s2546_s4 + $0x38] sm:$0xff] }
 0xd21   :  { %1641 = vmatpush.msra.mxu2 %v1838_v40 }
 0xd22   :  { %v1573_v13 = vsel %vm65_vm0, %v1569_v12, 0.0 }
 0xd23   :  { %1574 = vadd.xlane.f32.xlu0 %v1573_v13  ;;  %1642 = vmatpush.msra.mxu2 %v1837_v23 }
 0xd25   :  { %1643 = vmatpush.msra.mxu2 %v1836_v24 }
 0xd27   :  { %1644 = vmatpush.msra.mxu2 %v1835_v25 }
 0xd5c   :  { %v1572_v14 = vpop.xlane.xlu1 %1571 }
 0xd5d   :  { %v1576_v16 = vmul.f32 %v1572_v14, %v2243_v54 }
 0xd5f   :  { %v1578_v18 = vsub.f32 %v1568_v3, %v1576_v16 }
 0xd61   :  { %v1580_v19 = vmul.f32 %v1578_v18, %v1578_v18 }
 0xd63   :  { %v1582_v43 = vsel %vm65_vm0, %v1580_v19, 0.0 }
 0xd64   :  { %1583 = vadd.xlane.f32.xlu2 %v1582_v43 }
 0xd96   :  { %v1575_v46 = vpop.xlane.xlu0 %1574 }
 0xd97   :  { %v1577_v35 = vmul.f32 %v1575_v46, %v2243_v54 }
 0xd99   :  { %v1579_v20 = vsub.f32 %v1569_v12, %v1577_v35 }
 0xd9b   :  { %v1581_v21 = vmul.f32 %v1579_v20, %v1579_v20 }
 0xd9d   :  { %v1585_v22 = vsel %vm65_vm0, %v1581_v21, 0.0 }
 0xd9e   :  { %1586 = vadd.xlane.f32.xlu1 %v1585_v22 }
 0xdd7   :  { %v1584_v5 = vpop.xlane.xlu2 %1583 }
 0xdd8   :  { %v1588_v26 = vmul.f32 %v1584_v5, %v2243_v54 }
 0xdda   :  { %v1590_v27 = vadd.f32 1e-05, %v1588_v26 }
 0xddc   :  { %2002 = vrsqrt.f32 %v1590_v27  ;;  %vm1598_vm2 = vweird.f32 %v1590_v27 }
 0xde2   :  { %v2003_v28 = vpop.eup %2002 }
 0xde3   :  { %v1593_v7 = vmul.f32 %v2003_v28, %v1590_v27  ;;  %vm1599_vm1 = vweird.f32 %v2003_v28 }
 0xde4   :  { %vm1600_vm3 = vmor %vm1598_vm2, %vm1599_vm1 }
 0xde5   :  { %v1594_v29 = vmul.f32 %v2003_v28, %v1593_v7 }
 0xde7   :  { %v1595_v30 = vmul.f32 0.5, %v1594_v29 }
 0xde9   :  { %v1596_v31 = vsub.f32 1.5, %v1595_v30 }
 0xdeb   :  { %v1597_v32 = vmul.f32 %v2003_v28, %v1596_v31 }
 0xded   :  { %v1601_v34 = vsel %vm1600_vm3, %v2003_v28, %v1597_v32 }
 0xdee   :  { %v1612_v36 = vmul.f32 %v1601_v34, %v1578_v18 }
 0xdf0   :  { %v1615_v38 = vmul.f32 %v1614_v33, %v1612_v36 }
 0xdf2   :  { %v1618_v39 = vadd.f32 %v1617_v37, %v1615_v38 }
 0xdf4   :  { %1880 = vmatmul.msk.f32.vlgmr.msra.gmra.mxu2 %vm65_vm0, %v1618_v39 }
 0xe11   :  { %v1587_v58 = vpop.xlane.xlu1 %1586 }
 0xe12   :  { %v1589_v44 = vmul.f32 %v1587_v58, %v2243_v54 }
 0xe14   :  { %v1591_v47 = vadd.f32 1e-05, %v1589_v44 }
 0xe16   :  { %2004 = vrsqrt.f32 %v1591_v47  ;;  %vm1608_vm7 = vweird.f32 %v1591_v47 }
 0xe1c   :  { %v2005_v49 = vpop.eup %2004 }
 0xe1d   :  { %v1603_v50 = vmul.f32 %v2005_v49, %v1591_v47  ;;  %vm1609_vm6 = vweird.f32 %v2005_v49 }
 0xe1e   :  { %vm1610_vm8 = vmor %vm1608_vm7, %vm1609_vm6 }
 0xe1f   :  { %v1604_v51 = vmul.f32 %v2005_v49, %v1603_v50 }
 0xe21   :  { %v1605_v52 = vmul.f32 0.5, %v1604_v51 }
 0xe23   :  { %v1606_v53 = vsub.f32 1.5, %v1605_v52 }
 0xe25   :  { %v1607_v4 = vmul.f32 %v2005_v49, %v1606_v53 }
 0xe27   :  { %v1611_v55 = vsel %vm1610_vm8, %v2005_v49, %v1607_v4 }
 0xe28   :  { %v1613_v56 = vmul.f32 %v1611_v55, %v1579_v20 }
 0xe2a   :  { %v1616_v59 = vmul.f32 %v1614_v33, %v1613_v56  ;;  %v1730_v33 = vperm.slane %v2451_v11, 4 }
 0xe2c   :  { %v1619_v6 = vadd.f32 %v1617_v37, %v1616_v59  ;;  %v1733_v37 = vperm.slane %v2451_v11, 5 }
 0xe2e   :  { %1881 = vmatmul.msk.f32.gmra.mxu2 %vm65_vm0, %v1619_v6 }
 0xe77   :  { %v1646_v17 = vpop.f32.mrf.mxu2 }
 0xe78   :  { %v1647_v63 = vadd.f32 %v1927_v62, %v1646_v17 }
 0xe7a   :  { %v1652_v0 = vmax.f32 %v1647_v63, 0.0 }
 0xe7c   :  { %1882 = vmatmul.msk.f32.vlgmr.msra.gmra.mxu3 %vm811_vm11, %v1652_v0 }
 0xeb1   :  { %v1649_v1 = vpop.f32.mrf.mxu2 }
 0xeb2   :  { %v1650_v2 = vadd.f32 %v1927_v62, %v1649_v1 }
 0xeb4   :  { %v1653_v3 = vmax.f32 %v1650_v2, 0.0 }
 0xeb6   :  { %1883 = vmatmul.msk.f32.gmra.mxu3 %vm811_vm11, %v1653_v3 }
 0xeff   :  { %v1678_v9 = vpop.f32.mrf.mxu3 }
 0xf00   :  { %v1679_v10 = vadd.f32 %v1678_v9, %v1654_v8 }
 0xf02   :  { %v1684_v12 = vadd.f32 %v1679_v10, %v1618_v39 }
 0xf04   :  { %v1686_v13 = vsel %vm65_vm0, %v1684_v12, 0.0 }
 0xf05   :  { %1687 = vadd.xlane.f32.xlu0 %v1686_v13 }
 0xf39   :  { %v1681_v14 = vpop.f32.mrf.mxu3 }
 0xf3a   :  { %v1682_v16 = vadd.f32 %v1681_v14, %v1654_v8 }
 0xf3c   :  { %v1685_v18 = vadd.f32 %v1682_v16, %v1619_v6 }
 0xf3e   :  { %v1689_v19 = vsel %vm65_vm0, %v1685_v18, 0.0 }
 0xf3f   :  { %1690 = vadd.xlane.f32.xlu2 %v1689_v19 }
 0xf78   :  { %v1688_v43 = vpop.xlane.xlu0 %1687 }
 0xf79   :  { %v1692_v46 = vmul.f32 %v1688_v43, %v2243_v54 }
 0xf7b   :  { %v1694_v35 = vsub.f32 %v1684_v12, %v1692_v46  ;;  %v1736_v12 = vld [vmem:[%s2548_s9] sm:$0x3] }
 0xf7c   :  { %v1781_v16 = vperm.slane %v1736_v12, 0  ;;  %v1784_v19 = vperm.slane %v1736_v12, 1 }
 0xf7d   :  { %v1696_v20 = vmul.f32 %v1694_v35, %v1694_v35 }
 0xf7f   :  { %v1698_v21 = vsel %vm65_vm0, %v1696_v20, 0.0 }
 0xf80   :  { %1699 = vadd.xlane.f32.xlu1 %v1698_v21 }
 0xfb2   :  { %v1691_v22 = vpop.xlane.xlu2 %1690 }
 0xfb3   :  { %v1693_v40 = vmul.f32 %v1691_v22, %v2243_v54 }
 0xfb5   :  { %v1695_v23 = vsub.f32 %v1685_v18, %v1693_v40 }
 0xfb7   :  { %v1697_v24 = vmul.f32 %v1695_v23, %v1695_v23 }
 0xfb9   :  { %v1701_v25 = vsel %vm65_vm0, %v1697_v24, 0.0 }
 0xfba   :  { %1702 = vadd.xlane.f32.xlu0 %v1701_v25 }
 0xff3   :  { %v1700_v5 = vpop.xlane.xlu1 %1699 }
 0xff4   :  { %v1704_v26 = vmul.f32 %v1700_v5, %v2243_v54 }
 0xff6   :  { %v1706_v27 = vadd.f32 1e-05, %v1704_v26 }
 0xff8   :  { %2006 = vrsqrt.f32 %v1706_v27  ;;  %vm1714_vm10 = vweird.f32 %v1706_v27 }
 0xffe   :  { %v2007_v28 = vpop.eup %2006 }
 0xfff   :  { %v1709_v7 = vmul.f32 %v2007_v28, %v1706_v27  ;;  %vm1715_vm9 = vweird.f32 %v2007_v28 }
0x1000   :  { %vm1716_vm11 = vmor %vm1714_vm10, %vm1715_vm9 }
0x1001   :  { %v1710_v29 = vmul.f32 %v2007_v28, %v1709_v7 }
0x1003   :  { %v1711_v30 = vmul.f32 0.5, %v1710_v29 }
0x1005   :  { %v1712_v31 = vsub.f32 1.5, %v1711_v30 }
0x1007   :  { %v1713_v32 = vmul.f32 %v2007_v28, %v1712_v31 }
0x1009   :  { %v1717_v34 = vsel %vm1716_vm11, %v2007_v28, %v1713_v32 }
0x100a   :  { %v1728_v36 = vmul.f32 %v1717_v34, %v1694_v35 }
0x100c   :  { %v1731_v38 = vmul.f32 %v1730_v33, %v1728_v36 }
0x100e   :  { %v1734_v39 = vadd.f32 %v1733_v37, %v1731_v38 }
0x1010   :  { %v1737_v57 = vsel %vm65_vm0, %v1734_v39, 0.0 }
0x1011   :  { %1738 = vadd.xlane.f32.xlu2 %v1737_v57 }
0x102d   :  { %v1703_v41 = vpop.xlane.xlu0 %1702 }
0x102e   :  { %v1705_v42 = vmul.f32 %v1703_v41, %v2243_v54 }
0x1030   :  { %v1707_v58 = vadd.f32 1e-05, %v1705_v42 }
0x1032   :  { %2008 = vrsqrt.f32 %v1707_v58  ;;  %vm1724_vm13 = vweird.f32 %v1707_v58 }
0x1038   :  { %v2009_v44 = vpop.eup %2008 }
0x1039   :  { %v1719_v45 = vmul.f32 %v2009_v44, %v1707_v58  ;;  %vm1725_vm12 = vweird.f32 %v2009_v44 }
0x103a   :  { %vm1726_vm14 = vmor %vm1724_vm13, %vm1725_vm12 }
0x103b   :  { %v1720_v47 = vmul.f32 %v2009_v44, %v1719_v45 }
0x103d   :  { %v1721_v48 = vmul.f32 0.5, %v1720_v47 }
0x103f   :  { %v1722_v49 = vsub.f32 1.5, %v1721_v48 }
0x1041   :  { %v1723_v50 = vmul.f32 %v2009_v44, %v1722_v49 }
0x1043   :  { %v1727_v11 = vsel %vm1726_vm14, %v2009_v44, %v1723_v50 }
0x1044   :  { %v1729_v51 = vmul.f32 %v1727_v11, %v1695_v23 }
0x1046   :  { %v1732_v52 = vmul.f32 %v1730_v33, %v1729_v51 }
0x1048   :  { %v1735_v53 = vadd.f32 %v1733_v37, %v1732_v52 }
0x104a   :  { %v1740_v4 = vsel %vm65_vm0, %v1735_v53, 0.0 }
0x104b   :  { %1741 = vadd.xlane.f32.xlu1 %v1740_v4 }
0x1084   :  { %v1739_v55 = vpop.xlane.xlu2 %1738 }
0x1085   :  { %v1743_v56 = vmul.f32 %v1739_v55, %v2243_v54 }
0x1087   :  { %v1745_v59 = vsub.f32 %v1734_v39, %v1743_v56 }
0x1089   :  { %v1747_v6 = vmul.f32 %v1745_v59, %v1745_v59 }
0x108b   :  { %v1749_v15 = vsel %vm65_vm0, %v1747_v6, 0.0 }
0x108c   :  { %1750 = vadd.xlane.f32.xlu0 %v1749_v15 }
0x10be   :  { %v1742_v60 = vpop.xlane.xlu1 %1741 }
0x10bf   :  { %v1744_v61 = vmul.f32 %v1742_v60, %v2243_v54 }
0x10c1   :  { %v1746_v62 = vsub.f32 %v1735_v53, %v1744_v61 }
0x10c3   :  { %v1748_v17 = vmul.f32 %v1746_v62, %v1746_v62 }
0x10c5   :  { %v1752_v63 = vsel %vm65_vm0, %v1748_v17, 0.0 }
0x10c6   :  { %1753 = vadd.xlane.f32.xlu2 %v1752_v63 }
0x10ff   :  { %v1751_v0 = vpop.xlane.xlu0 %1750 }
0x1100   :  { %v1755_v1 = vmul.f32 %v1751_v0, %v2243_v54 }
0x1102   :  { %v1757_v2 = vadd.f32 1e-05, %v1755_v1 }
0x1104   :  { %2010 = vrsqrt.f32 %v1757_v2  ;;  %vm1765_vm4 = vweird.f32 %v1757_v2 }
0x110a   :  { %v2011_v3 = vpop.eup %2010 }
0x110b   :  { %v1760_v8 = vmul.f32 %v2011_v3, %v1757_v2  ;;  %vm1766_vm15 = vweird.f32 %v2011_v3 }
0x110c   :  { %vm1767_vm5 = vmor %vm1765_vm4, %vm1766_vm15 }
0x110d   :  { %v1761_v9 = vmul.f32 %v2011_v3, %v1760_v8 }
0x110f   :  { %v1762_v10 = vmul.f32 0.5, %v1761_v9 }
0x1111   :  { %v1763_v13 = vsub.f32 1.5, %v1762_v10 }
0x1113   :  { %v1764_v14 = vmul.f32 %v2011_v3, %v1763_v13 }
0x1115   :  { %v1768_v18 = vsel %vm1767_vm5, %v2011_v3, %v1764_v14 }
0x1116   :  { %v1779_v43 = vmul.f32 %v1768_v18, %v1745_v59 }
0x1118   :  { %v1782_v46 = vmul.f32 %v1781_v16, %v1779_v43 }
0x111a   :  { %v1785_v35 = vadd.f32 %v1784_v19, %v1782_v46 }
0x111c   :  { %1787 = vst.msk [vmem:[%s2549_s10] sm:$0xff] %vm65_vm0, %v1785_v35 }
0x1139   :  { %v1754_v20 = vpop.xlane.xlu2 %1753 }
0x113a   :  { %v1756_v21 = vmul.f32 %v1754_v20, %v2243_v54 }
0x113c   :  { %v1758_v22 = vadd.f32 1e-05, %v1756_v21 }
0x113e   :  { %2012 = vrsqrt.f32 %v1758_v22  ;;  %vm1775_vm2 = vweird.f32 %v1758_v22 }
0x1144   :  { %v2013_v40 = vpop.eup %2012 }
0x1145   :  { %v1770_v23 = vmul.f32 %v2013_v40, %v1758_v22  ;;  %vm1776_vm1 = vweird.f32 %v2013_v40 }
0x1146   :  { %vm1777_vm3 = vmor %vm1775_vm2, %vm1776_vm1 }
0x1147   :  { %v1771_v24 = vmul.f32 %v2013_v40, %v1770_v23 }
0x1149   :  { %v1772_v25 = vmul.f32 0.5, %v1771_v24 }
0x114b   :  { %v1773_v5 = vsub.f32 1.5, %v1772_v25 }
0x114d   :  { %v1774_v26 = vmul.f32 %v2013_v40, %v1773_v5 }
0x114f   :  { %v1778_v27 = vsel %vm1777_vm3, %v2013_v40, %v1774_v26 }
0x1150   :  { %v1780_v28 = vmul.f32 %v1778_v27, %v1746_v62 }
0x1152   :  { %v1783_v7 = vmul.f32 %v1781_v16, %v1780_v28 }
0x1154   :  { %v1786_v29 = vadd.f32 %v1784_v19, %v1783_v7 }
0x1156   :  { %1788 = vst.msk [vmem:[%s2549_s10 + $0x8] sm:$0xff] %vm65_vm0, %v1786_v29 }

</bundles_post_ra>
